<compile_context>
chip_gen: v7x
topology: tpu7x:2x2x1
jax: 0.10.0
libtpu: 0.0.40
codegen_flags: <defaults>
</compile_context>

<pallas_src>
import functools

import jax
import jax.numpy as jnp
from jax import lax
from jax.experimental import pallas as pl
from jax.experimental.pallas import tpu as pltpu

EPS = 1e-5
NEG_SLOPE = 0.2
MAX_TILE_N = 2048                       # lane tile over the point axis (v7x-safe)
VMEM_LIMIT_BYTES = 32 * 1024 * 1024     # explicit scoped-VMEM budget


def _leaky_relu(h):
    return jnp.where(h > 0, h, NEG_SLOPE * h)


# ---------------------------------------------------------------------------
# Kernels (all operate on (C, tile_n) slabs: channels on sublanes, points on lanes)
# ---------------------------------------------------------------------------

def _layer1_kernel(x_ref, w_ref, h_ref, stats_ref):
    """conv1 (1x1 conv, K=3) via VPU broadcast-FMAs + bn1 partial statistics."""
    x = x_ref[...].astype(jnp.float32)          # (3, tile_n)
    w = w_ref[...].astype(jnp.float32)          # (32, 3)
    h = (w[:, 0:1] * x[0:1, :]
         + w[:, 1:2] * x[1:2, :]
         + w[:, 2:3] * x[2:3, :])               # (32, tile_n) f32
    # Padded columns of x are zero and conv1 has no bias -> they contribute 0,
    # so no masking is needed for the statistics of this layer.
    stats_ref[:, 0:1] = jnp.sum(h, axis=1, keepdims=True)
    stats_ref[:, 1:2] = jnp.sum(h * h, axis=1, keepdims=True)
    h_ref[...] = h.astype(h_ref.dtype)


def _mid_layer_kernel(h_in_ref, scale_ref, shift_ref, w_ref, h_out_ref, stats_ref,
                      *, tile_n, n_valid, need_mask):
    """Fused: BN(layer k) apply + LeakyReLU, then layer k+1 1x1-conv matmul,
    accumulating layer-(k+1) BN partial statistics for this tile."""
    a = h_in_ref[...].astype(jnp.float32)                       # (Cin, tile_n)
    a = _leaky_relu(a * scale_ref[...] + shift_ref[...])        # folded BN FMA
    h = jnp.dot(w_ref[...], a.astype(w_ref.dtype),
                preferred_element_type=jnp.float32)             # (Cout, tile_n) f32
    hs = h
    if need_mask:  # mask padded point columns out of the statistics
        col = (pl.program_id(1) * tile_n
               + lax.broadcasted_iota(jnp.int32, (1, tile_n), 1))
        hs = jnp.where(col < n_valid, h, 0.0)
    stats_ref[:, 0:1] = jnp.sum(hs, axis=1, keepdims=True)
    stats_ref[:, 1:2] = jnp.sum(hs * hs, axis=1, keepdims=True)
    h_out_ref[...] = h.astype(h_out_ref.dtype)


def _final_kernel(h_in_ref, scale_ref, shift_ref, out_ref):
    """BN(layer 3) apply + LeakyReLU -> final NCW output tile."""
    a = h_in_ref[...].astype(jnp.float32)
    out_ref[...] = _leaky_relu(a * scale_ref[...] + shift_ref[...]).astype(out_ref.dtype)


# ---------------------------------------------------------------------------
# Host-side glue
# ---------------------------------------------------------------------------

def _finalize_bn(stats, gamma, beta, count):
    """Reduce per-tile partial sums and fold BN into one per-channel scale/shift."""
    sums = jnp.sum(stats[..., 0], axis=(0, 1))                  # (C,)
    sumsq = jnp.sum(stats[..., 1], axis=(0, 1))                 # (C,)
    mean = sums / count
    var = jnp.maximum(sumsq / count - mean * mean, 0.0)         # biased (train-mode) var
    scale = gamma * lax.rsqrt(var + EPS)
    shift = beta - mean * scale
    return scale[:, None], shift[:, None]                       # (C, 1) lane-broadcast


def pointnet_forward(x_bcn, params, *, store_dtype=jnp.bfloat16, max_tile_n=MAX_TILE_N):
    """x_bcn: (B, 3, N) float32 (PyTorch NCW). Returns (B, 128, N) float32."""
    w1, w2, w3, g1, b1, g2, b2, g3, b3 = params
    B, cin, N = x_bcn.shape
    assert cin == 3

    # Lane tile over the point axis.
    if N <= max_tile_n:
        tile_n, n_pad = N, N
    else:
        tile_n = max_tile_n
        n_pad = -(-N // tile_n) * tile_n
    nj = n_pad // tile_n
    need_mask = n_pad != N

    x = x_bcn.astype(jnp.float32)
    if need_mask:
        x = jnp.pad(x, ((0, 0), (0, 0), (0, n_pad - N)))

    grid = (B, nj)
    count = float(B * N)

    compiler_params = pltpu.CompilerParams(
        dimension_semantics=("parallel", "parallel"),
        vmem_limit_bytes=VMEM_LIMIT_BYTES,
    )

    def act_spec(c):
        # (B, C, N_pad) activations: one (C, tile_n) slab per grid step.
        return pl.BlockSpec((None, c, tile_n), lambda b, j: (b, 0, j))

    def const_spec(shape):
        # Parameters stay VMEM-resident across grid steps (constant block index).
        return pl.BlockSpec(shape, lambda b, j: tuple(0 for _ in shape))

    def stats_spec(c):
        # Per-grid-step partial (sum, sumsq): race-free under parallel semantics.
        return pl.BlockSpec((None, None, c, 2), lambda b, j: (b, j, 0, 0))

    def stats_shape(c):
        return jax.ShapeDtypeStruct((B, nj, c, 2), jnp.float32)

    # Pass 1: conv1 (VPU) + bn1 partial statistics.
    h1, s1 = pl.pallas_call(
        _layer1_kernel,
        grid=grid,
        in_specs=[act_spec(3), const_spec((32, 3))],
        out_specs=[act_spec(32), stats_spec(32)],
        out_shape=[jax.ShapeDtypeStruct((B, 32, n_pad), store_dtype), stats_shape(32)],
        compiler_params=compiler_params,
    )(x, w1.astype(jnp.float32))
    scale1, shift1 = _finalize_bn(s1, g1, b1, count)

    # Pass 2: bn1 apply + LeakyReLU + conv2 (MXU) + bn2 partial statistics.
    h2, s2 = pl.pallas_call(
        functools.partial(_mid_layer_kernel, tile_n=tile_n, n_valid=N,
                          need_mask=need_mask),
        grid=grid,
        in_specs=[act_spec(32), const_spec((32, 1)), const_spec((32, 1)),
                  const_spec((64, 32))],
        out_specs=[act_spec(64), stats_spec(64)],
        out_shape=[jax.ShapeDtypeStruct((B, 64, n_pad), store_dtype), stats_shape(64)],
        compiler_params=compiler_params,
    )(h1, scale1, shift1, w2.astype(store_dtype))
    scale2, shift2 = _finalize_bn(s2, g2, b2, count)

    # Pass 3: bn2 apply + LeakyReLU + conv3 (MXU) + bn3 partial statistics.
    h3, s3 = pl.pallas_call(
        functools.partial(_mid_layer_kernel, tile_n=tile_n, n_valid=N,
                          need_mask=need_mask),
        grid=grid,
        in_specs=[act_spec(64), const_spec((64, 1)), const_spec((64, 1)),
                  const_spec((128, 64))],
        out_specs=[act_spec(128), stats_spec(128)],
        out_shape=[jax.ShapeDtypeStruct((B, 128, n_pad), store_dtype), stats_shape(128)],
        compiler_params=compiler_params,
    )(h2, scale2, shift2, w3.astype(store_dtype))
    scale3, shift3 = _finalize_bn(s3, g3, b3, count)

    # Pass 4: bn3 apply + LeakyReLU -> (B, 128, N) NCW output (no wrapper transpose).
    out = pl.pallas_call(
        _final_kernel,
        grid=grid,
        in_specs=[act_spec(128), const_spec((128, 1)), const_spec((128, 1))],
        out_specs=act_spec(128),
        out_shape=jax.ShapeDtypeStruct((B, 128, n_pad), jnp.float32),
        compiler_params=compiler_params,
    )(h3, scale3, shift3)

    if need_mask:
        out = out[:, :, :N]
    return out


def pointnet_reference(x, params):
    """Pure-JAX f32 reference (training-mode BN), for a sanity check."""
    w1, w2, w3, g1, b1, g2, b2, g3, b3 = params

    def layer(h, w, g, b):
        h = jnp.einsum("oc,bcn->bon", w, h)
        mean = jnp.mean(h, axis=(0, 2), keepdims=True)
        var = jnp.mean(jnp.square(h - mean), axis=(0, 2), keepdims=True)
        h = (h - mean) * lax.rsqrt(var + EPS)
        h = h * g[None, :, None] + b[None, :, None]
        return jnp.where(h > 0, h, NEG_SLOPE * h)

    h = layer(x.astype(jnp.float32), w1, g1, b1)
    h = layer(h, w2, g2, b2)
    h = layer(h, w3, g3, b3)
    return h


def init_params(key):
    """PyTorch-shaped params: Conv1d(k=1) weight (Cout, Cin); BN gamma=1, beta=0."""
    k1, k2, k3 = jax.random.split(key, 3)

    def conv_w(k, cout, cin):
        bound = 1.0 / (cin ** 0.5)
        return jax.random.uniform(k, (cout, cin), jnp.float32, -bound, bound)

    w1 = conv_w(k1, 32, 3)
    w2 = conv_w(k2, 64, 32)
    w3 = conv_w(k3, 128, 64)
    ones = lambda c: jnp.ones((c,), jnp.float32)
    zeros = lambda c: jnp.zeros((c,), jnp.float32)
    return (w1, w2, w3, ones(32), zeros(32), ones(64), zeros(64), ones(128), zeros(128))


if __name__ == "__main__":
    key = jax.random.PRNGKey(0)
    k_params, k_x = jax.random.split(key)
    params = init_params(k_params)

    B, N = 2, 64                          # small point cloud: (B, 3, N) NCW
    x = jax.random.normal(k_x, (B, 3, N), dtype=jnp.float32)

    out = jax.jit(pointnet_forward)(x, params)
    out = jax.block_until_ready(out)

    assert out.shape == (B, 128, N), out.shape
    assert not bool(jnp.isnan(out).any())

    ref = pointnet_reference(x, params)
    max_err = float(jnp.max(jnp.abs(out - ref)))
    assert max_err < 0.15, max_err        # bf16 matmul / intermediate-storage tolerance

    print("KERNEL_OK")
</pallas_src>

<mosaic_0001>
module attributes {stable_mosaic.version = 11 : i64} {
  func.func @_mid_layer_kernel(%arg0: i32, %arg1: i32, %arg2: memref<1x32x64xbf16, #tpu.memory_space<vmem>>, %arg3: memref<32x1xf32, #tpu.memory_space<vmem>>, %arg4: memref<32x1xf32, #tpu.memory_space<vmem>>, %arg5: memref<64x32xbf16, #tpu.memory_space<vmem>>, %arg6: memref<1x64x64xbf16, #tpu.memory_space<vmem>>, %arg7: memref<1x1x64x2xf32, #tpu.memory_space<vmem>>) attributes {dimension_semantics = [#tpu.dimension_semantics<parallel>, #tpu.dimension_semantics<parallel>], iteration_bounds = array<i64: 2, 1>, scalar_prefetch = 0 : i64, scratch_operands = 0 : i64, tpu.core_type = #tpu.core_type<tc>, window_params = [{transform_indices = @transform_0, window_bounds = array<i64: 1, 32, 64>}, {pipeline_mode = #tpu.pipeline_mode<synchronous>, transform_indices = @transform_1, window_bounds = array<i64: 32, 1>}, {pipeline_mode = #tpu.pipeline_mode<synchronous>, transform_indices = @transform_2, window_bounds = array<i64: 32, 1>}, {pipeline_mode = #tpu.pipeline_mode<synchronous>, transform_indices = @transform_3, window_bounds = array<i64: 64, 32>}, {transform_indices = @transform_4, window_bounds = array<i64: 1, 64, 64>}, {transform_indices = @transform_5, window_bounds = array<i64: 1, 1, 64, 2>}]} {
    %c0 = arith.constant 0 : index
    %c0_0 = arith.constant 0 : index
    %c0_1 = arith.constant 0 : index
    %0 = vector.load %arg2[%c0, %c0_0, %c0_1] : memref<1x32x64xbf16, #tpu.memory_space<vmem>>, vector<1x32x64xbf16>
    %1 = vector.shape_cast %0 : vector<1x32x64xbf16> to vector<32x64xbf16>
    %2 = arith.extf %1 : vector<32x64xbf16> to vector<32x64xf32>
    %c0_2 = arith.constant 0 : index
    %c0_3 = arith.constant 0 : index
    %3 = vector.load %arg3[%c0_2, %c0_3] : memref<32x1xf32, #tpu.memory_space<vmem>>, vector<32x1xf32>
    %4 = vector.broadcast %3 : vector<32x1xf32> to vector<32x64xf32>
    %5 = arith.mulf %2, %4 : vector<32x64xf32>
    %c0_4 = arith.constant 0 : index
    %c0_5 = arith.constant 0 : index
    %6 = vector.load %arg4[%c0_4, %c0_5] : memref<32x1xf32, #tpu.memory_space<vmem>>, vector<32x1xf32>
    %7 = vector.broadcast %6 : vector<32x1xf32> to vector<32x64xf32>
    %8 = arith.addf %5, %7 : vector<32x64xf32>
    %cst = arith.constant 0.000000e+00 : f32
    %9 = vector.broadcast %cst : f32 to vector<32x64xf32>
    %10 = arith.cmpf ogt, %8, %9 : vector<32x64xf32>
    %cst_6 = arith.constant 2.000000e-01 : f32
    %11 = vector.broadcast %cst_6 : f32 to vector<32x64xf32>
    %12 = arith.mulf %11, %8 : vector<32x64xf32>
    %13 = arith.select %10, %8, %12 : vector<32x64xi1>, vector<32x64xf32>
    %c0_7 = arith.constant 0 : index
    %c0_8 = arith.constant 0 : index
    %14 = vector.load %arg5[%c0_7, %c0_8] : memref<64x32xbf16, #tpu.memory_space<vmem>>, vector<64x32xbf16>
    %15 = arith.truncf %13 : vector<32x64xf32> to vector<32x64xbf16>
    %cst_9 = arith.constant dense<0.000000e+00> : vector<64x64xf32>
    %16 = tpu.matmul %14, %15, %cst_9 {dimension_numbers = #tpu.dot_dimension_numbers<[1], [0], [0], [1], [0, 0, 1, 1], [], []>} : vector<64x32xbf16>, vector<32x64xbf16>, vector<64x64xf32> -> vector<64x64xf32>
    %cst_10 = arith.constant dense<0.000000e+00> : vector<64xf32>
    %17 = vector.multi_reduction <add>, %16, %cst_10 [1] : vector<64x64xf32> to vector<64xf32>
    %18 = vector.shape_cast %17 : vector<64xf32> to vector<64x1xf32>
    %c0_11 = arith.constant 0 : index
    %c0_12 = arith.constant 0 : index
    %c0_13 = arith.constant 0 : index
    %c0_14 = arith.constant 0 : index
    %19 = vector.load %arg7[%c0_11, %c0_12, %c0_13, %c0_14] : memref<1x1x64x2xf32, #tpu.memory_space<vmem>>, vector<1x1x64x1xf32>
    %20 = vector.shape_cast %19 : vector<1x1x64x1xf32> to vector<64x1xf32>
    %21 = vector.shape_cast %18 : vector<64x1xf32> to vector<1x1x64x1xf32>
    tpu.vector_store %arg7[%c0_11, %c0_12, %c0_13, %c0_14], %21 {strides = array<i32>} : memref<1x1x64x2xf32, #tpu.memory_space<vmem>>, vector<1x1x64x1xf32>,
    %22 = arith.mulf %16, %16 : vector<64x64xf32>
    %cst_15 = arith.constant dense<0.000000e+00> : vector<64xf32>
    %23 = vector.multi_reduction <add>, %22, %cst_15 [1] : vector<64x64xf32> to vector<64xf32>
    %24 = vector.shape_cast %23 : vector<64xf32> to vector<64x1xf32>
    %c0_16 = arith.constant 0 : index
    %c0_17 = arith.constant 0 : index
    %c0_18 = arith.constant 0 : index
    %c1 = arith.constant 1 : index
    %25 = vector.load %arg7[%c0_16, %c0_17, %c0_18, %c1] : memref<1x1x64x2xf32, #tpu.memory_space<vmem>>, vector<1x1x64x1xf32>
    %26 = vector.shape_cast %25 : vector<1x1x64x1xf32> to vector<64x1xf32>
    %27 = vector.shape_cast %24 : vector<64x1xf32> to vector<1x1x64x1xf32>
    tpu.vector_store %arg7[%c0_16, %c0_17, %c0_18, %c1], %27 {strides = array<i32>} : memref<1x1x64x2xf32, #tpu.memory_space<vmem>>, vector<1x1x64x1xf32>,
    %28 = arith.truncf %16 : vector<64x64xf32> to vector<64x64xbf16>
    %c0_19 = arith.constant 0 : index
    %c0_20 = arith.constant 0 : index
    %c0_21 = arith.constant 0 : index
    %29 = vector.load %arg6[%c0_19, %c0_20, %c0_21] : memref<1x64x64xbf16, #tpu.memory_space<vmem>>, vector<1x64x64xbf16>
    %30 = vector.shape_cast %29 : vector<1x64x64xbf16> to vector<64x64xbf16>
    %31 = vector.shape_cast %28 : vector<64x64xbf16> to vector<1x64x64xbf16>
    tpu.vector_store %arg6[%c0_19, %c0_20, %c0_21], %31 {strides = array<i32>} : memref<1x64x64xbf16, #tpu.memory_space<vmem>>, vector<1x64x64xbf16>,
    return
  }
  func.func @transform_0(%arg0: i32, %arg1: i32) -> (i32, i32, i32) {
    %c0_i32 = arith.constant 0 : i32
    %c0_i32_0 = arith.constant 0 : i32
    return %arg0, %c0_i32, %arg1 : i32, i32, i32
  }
  func.func @transform_1(%arg0: i32, %arg1: i32) -> (i32, i32) {
    %c0_i32 = arith.constant 0 : i32
    %c0_i32_0 = arith.constant 0 : i32
    %c0_i32_1 = arith.constant 0 : i32
    return %c0_i32, %c0_i32_0 : i32, i32
  }
  func.func @transform_2(%arg0: i32, %arg1: i32) -> (i32, i32) {
    %c0_i32 = arith.constant 0 : i32
    %c0_i32_0 = arith.constant 0 : i32
    %c0_i32_1 = arith.constant 0 : i32
    return %c0_i32, %c0_i32_0 : i32, i32
  }
  func.func @transform_3(%arg0: i32, %arg1: i32) -> (i32, i32) {
    %c0_i32 = arith.constant 0 : i32
    %c0_i32_0 = arith.constant 0 : i32
    %c0_i32_1 = arith.constant 0 : i32
    return %c0_i32, %c0_i32_0 : i32, i32
  }
  func.func @transform_4(%arg0: i32, %arg1: i32) -> (i32, i32, i32) {
    %c0_i32 = arith.constant 0 : i32
    %c0_i32_0 = arith.constant 0 : i32
    return %arg0, %c0_i32, %arg1 : i32, i32, i32
  }
  func.func @transform_5(%arg0: i32, %arg1: i32) -> (i32, i32, i32, i32) {
    %c0_i32 = arith.constant 0 : i32
    %c0_i32_0 = arith.constant 0 : i32
    %c0_i32_1 = arith.constant 0 : i32
    return %arg0, %arg1, %c0_i32, %c0_i32_0 : i32, i32, i32, i32
  }
}

module attributes {stable_mosaic.version = 11 : i64} {
  func.func @_layer1_kernel(%arg0: i32, %arg1: i32, %arg2: memref<1x3x64xf32, #tpu.memory_space<vmem>>, %arg3: memref<32x3xf32, #tpu.memory_space<vmem>>, %arg4: memref<1x32x64xbf16, #tpu.memory_space<vmem>>, %arg5: memref<1x1x32x2xf32, #tpu.memory_space<vmem>>) attributes {dimension_semantics = [#tpu.dimension_semantics<parallel>, #tpu.dimension_semantics<parallel>], iteration_bounds = array<i64: 2, 1>, scalar_prefetch = 0 : i64, scratch_operands = 0 : i64, tpu.core_type = #tpu.core_type<tc>, window_params = [{transform_indices = @transform_0, window_bounds = array<i64: 1, 3, 64>}, {pipeline_mode = #tpu.pipeline_mode<synchronous>, transform_indices = @transform_1, window_bounds = array<i64: 32, 3>}, {transform_indices = @transform_2, window_bounds = array<i64: 1, 32, 64>}, {transform_indices = @transform_3, window_bounds = array<i64: 1, 1, 32, 2>}]} {
    %c0 = arith.constant 0 : index
    %c0_0 = arith.constant 0 : index
    %c0_1 = arith.constant 0 : index
    %0 = vector.load %arg2[%c0, %c0_0, %c0_1] : memref<1x3x64xf32, #tpu.memory_space<vmem>>, vector<1x3x64xf32>
    %1 = vector.shape_cast %0 : vector<1x3x64xf32> to vector<3x64xf32>
    %c0_2 = arith.constant 0 : index
    %c0_3 = arith.constant 0 : index
    %2 = vector.load %arg3[%c0_2, %c0_3] : memref<32x3xf32, #tpu.memory_space<vmem>>, vector<32x3xf32>
    %3 = vector.extract_strided_slice %2 {offsets = [0, 0], sizes = [32, 1], strides = [1, 1]} : vector<32x3xf32> to vector<32x1xf32>
    %4 = vector.extract_strided_slice %1 {offsets = [0, 0], sizes = [1, 64], strides = [1, 1]} : vector<3x64xf32> to vector<1x64xf32>
    %5 = vector.broadcast %3 : vector<32x1xf32> to vector<32x64xf32>
    %6 = vector.broadcast %4 : vector<1x64xf32> to vector<32x64xf32>
    %7 = arith.mulf %5, %6 : vector<32x64xf32>
    %8 = vector.extract_strided_slice %2 {offsets = [0, 1], sizes = [32, 1], strides = [1, 1]} : vector<32x3xf32> to vector<32x1xf32>
    %9 = vector.extract_strided_slice %1 {offsets = [1, 0], sizes = [1, 64], strides = [1, 1]} : vector<3x64xf32> to vector<1x64xf32>
    %10 = vector.broadcast %8 : vector<32x1xf32> to vector<32x64xf32>
    %11 = vector.broadcast %9 : vector<1x64xf32> to vector<32x64xf32>
    %12 = arith.mulf %10, %11 : vector<32x64xf32>
    %13 = arith.addf %7, %12 : vector<32x64xf32>
    %14 = vector.extract_strided_slice %2 {offsets = [0, 2], sizes = [32, 1], strides = [1, 1]} : vector<32x3xf32> to vector<32x1xf32>
    %15 = vector.extract_strided_slice %1 {offsets = [2, 0], sizes = [1, 64], strides = [1, 1]} : vector<3x64xf32> to vector<1x64xf32>
    %16 = vector.broadcast %14 : vector<32x1xf32> to vector<32x64xf32>
    %17 = vector.broadcast %15 : vector<1x64xf32> to vector<32x64xf32>
    %18 = arith.mulf %16, %17 : vector<32x64xf32>
    %19 = arith.addf %13, %18 : vector<32x64xf32>
    %cst = arith.constant dense<0.000000e+00> : vector<32xf32>
    %20 = vector.multi_reduction <add>, %19, %cst [1] : vector<32x64xf32> to vector<32xf32>
    %21 = vector.shape_cast %20 : vector<32xf32> to vector<32x1xf32>
    %c0_4 = arith.constant 0 : index
    %c0_5 = arith.constant 0 : index
    %c0_6 = arith.constant 0 : index
    %c0_7 = arith.constant 0 : index
    %22 = vector.load %arg5[%c0_4, %c0_5, %c0_6, %c0_7] : memref<1x1x32x2xf32, #tpu.memory_space<vmem>>, vector<1x1x32x1xf32>
    %23 = vector.shape_cast %22 : vector<1x1x32x1xf32> to vector<32x1xf32>
    %24 = vector.shape_cast %21 : vector<32x1xf32> to vector<1x1x32x1xf32>
    tpu.vector_store %arg5[%c0_4, %c0_5, %c0_6, %c0_7], %24 {strides = array<i32>} : memref<1x1x32x2xf32, #tpu.memory_space<vmem>>, vector<1x1x32x1xf32>,
    %25 = arith.mulf %19, %19 : vector<32x64xf32>
    %cst_8 = arith.constant dense<0.000000e+00> : vector<32xf32>
    %26 = vector.multi_reduction <add>, %25, %cst_8 [1] : vector<32x64xf32> to vector<32xf32>
    %27 = vector.shape_cast %26 : vector<32xf32> to vector<32x1xf32>
    %c0_9 = arith.constant 0 : index
    %c0_10 = arith.constant 0 : index
    %c0_11 = arith.constant 0 : index
    %c1 = arith.constant 1 : index
    %28 = vector.load %arg5[%c0_9, %c0_10, %c0_11, %c1] : memref<1x1x32x2xf32, #tpu.memory_space<vmem>>, vector<1x1x32x1xf32>
    %29 = vector.shape_cast %28 : vector<1x1x32x1xf32> to vector<32x1xf32>
    %30 = vector.shape_cast %27 : vector<32x1xf32> to vector<1x1x32x1xf32>
    tpu.vector_store %arg5[%c0_9, %c0_10, %c0_11, %c1], %30 {strides = array<i32>} : memref<1x1x32x2xf32, #tpu.memory_space<vmem>>, vector<1x1x32x1xf32>,
    %31 = arith.truncf %19 : vector<32x64xf32> to vector<32x64xbf16>
    %c0_12 = arith.constant 0 : index
    %c0_13 = arith.constant 0 : index
    %c0_14 = arith.constant 0 : index
    %32 = vector.load %arg4[%c0_12, %c0_13, %c0_14] : memref<1x32x64xbf16, #tpu.memory_space<vmem>>, vector<1x32x64xbf16>
    %33 = vector.shape_cast %32 : vector<1x32x64xbf16> to vector<32x64xbf16>
    %34 = vector.shape_cast %31 : vector<32x64xbf16> to vector<1x32x64xbf16>
    tpu.vector_store %arg4[%c0_12, %c0_13, %c0_14], %34 {strides = array<i32>} : memref<1x32x64xbf16, #tpu.memory_space<vmem>>, vector<1x32x64xbf16>,
    return
  }
  func.func @transform_0(%arg0: i32, %arg1: i32) -> (i32, i32, i32) {
    %c0_i32 = arith.constant 0 : i32
    %c0_i32_0 = arith.constant 0 : i32
    return %arg0, %c0_i32, %arg1 : i32, i32, i32
  }
  func.func @transform_1(%arg0: i32, %arg1: i32) -> (i32, i32) {
    %c0_i32 = arith.constant 0 : i32
    %c0_i32_0 = arith.constant 0 : i32
    %c0_i32_1 = arith.constant 0 : i32
    return %c0_i32, %c0_i32_0 : i32, i32
  }
  func.func @transform_2(%arg0: i32, %arg1: i32) -> (i32, i32, i32) {
    %c0_i32 = arith.constant 0 : i32
    %c0_i32_0 = arith.constant 0 : i32
    return %arg0, %c0_i32, %arg1 : i32, i32, i32
  }
  func.func @transform_3(%arg0: i32, %arg1: i32) -> (i32, i32, i32, i32) {
    %c0_i32 = arith.constant 0 : i32
    %c0_i32_0 = arith.constant 0 : i32
    %c0_i32_1 = arith.constant 0 : i32
    return %arg0, %arg1, %c0_i32, %c0_i32_0 : i32, i32, i32, i32
  }
}

module attributes {stable_mosaic.version = 11 : i64} {
  func.func @_mid_layer_kernel(%arg0: i32, %arg1: i32, %arg2: memref<1x64x64xbf16, #tpu.memory_space<vmem>>, %arg3: memref<64x1xf32, #tpu.memory_space<vmem>>, %arg4: memref<64x1xf32, #tpu.memory_space<vmem>>, %arg5: memref<128x64xbf16, #tpu.memory_space<vmem>>, %arg6: memref<1x128x64xbf16, #tpu.memory_space<vmem>>, %arg7: memref<1x1x128x2xf32, #tpu.memory_space<vmem>>) attributes {dimension_semantics = [#tpu.dimension_semantics<parallel>, #tpu.dimension_semantics<parallel>], iteration_bounds = array<i64: 2, 1>, scalar_prefetch = 0 : i64, scratch_operands = 0 : i64, tpu.core_type = #tpu.core_type<tc>, window_params = [{transform_indices = @transform_0, window_bounds = array<i64: 1, 64, 64>}, {pipeline_mode = #tpu.pipeline_mode<synchronous>, transform_indices = @transform_1, window_bounds = array<i64: 64, 1>}, {pipeline_mode = #tpu.pipeline_mode<synchronous>, transform_indices = @transform_2, window_bounds = array<i64: 64, 1>}, {pipeline_mode = #tpu.pipeline_mode<synchronous>, transform_indices = @transform_3, window_bounds = array<i64: 128, 64>}, {transform_indices = @transform_4, window_bounds = array<i64: 1, 128, 64>}, {transform_indices = @transform_5, window_bounds = array<i64: 1, 1, 128, 2>}]} {
    %c0 = arith.constant 0 : index
    %c0_0 = arith.constant 0 : index
    %c0_1 = arith.constant 0 : index
    %0 = vector.load %arg2[%c0, %c0_0, %c0_1] : memref<1x64x64xbf16, #tpu.memory_space<vmem>>, vector<1x64x64xbf16>
    %1 = vector.shape_cast %0 : vector<1x64x64xbf16> to vector<64x64xbf16>
    %2 = arith.extf %1 : vector<64x64xbf16> to vector<64x64xf32>
    %c0_2 = arith.constant 0 : index
    %c0_3 = arith.constant 0 : index
    %3 = vector.load %arg3[%c0_2, %c0_3] : memref<64x1xf32, #tpu.memory_space<vmem>>, vector<64x1xf32>
    %4 = vector.broadcast %3 : vector<64x1xf32> to vector<64x64xf32>
    %5 = arith.mulf %2, %4 : vector<64x64xf32>
    %c0_4 = arith.constant 0 : index
    %c0_5 = arith.constant 0 : index
    %6 = vector.load %arg4[%c0_4, %c0_5] : memref<64x1xf32, #tpu.memory_space<vmem>>, vector<64x1xf32>
    %7 = vector.broadcast %6 : vector<64x1xf32> to vector<64x64xf32>
    %8 = arith.addf %5, %7 : vector<64x64xf32>
    %cst = arith.constant 0.000000e+00 : f32
    %9 = vector.broadcast %cst : f32 to vector<64x64xf32>
    %10 = arith.cmpf ogt, %8, %9 : vector<64x64xf32>
    %cst_6 = arith.constant 2.000000e-01 : f32
    %11 = vector.broadcast %cst_6 : f32 to vector<64x64xf32>
    %12 = arith.mulf %11, %8 : vector<64x64xf32>
    %13 = arith.select %10, %8, %12 : vector<64x64xi1>, vector<64x64xf32>
    %c0_7 = arith.constant 0 : index
    %c0_8 = arith.constant 0 : index
    %14 = vector.load %arg5[%c0_7, %c0_8] : memref<128x64xbf16, #tpu.memory_space<vmem>>, vector<128x64xbf16>
    %15 = arith.truncf %13 : vector<64x64xf32> to vector<64x64xbf16>
    %cst_9 = arith.constant dense<0.000000e+00> : vector<128x64xf32>
    %16 = tpu.matmul %14, %15, %cst_9 {dimension_numbers = #tpu.dot_dimension_numbers<[1], [0], [0], [1], [0, 0, 1, 1], [], []>} : vector<128x64xbf16>, vector<64x64xbf16>, vector<128x64xf32> -> vector<128x64xf32>
    %cst_10 = arith.constant dense<0.000000e+00> : vector<128xf32>
    %17 = vector.multi_reduction <add>, %16, %cst_10 [1] : vector<128x64xf32> to vector<128xf32>
    %18 = vector.shape_cast %17 : vector<128xf32> to vector<128x1xf32>
    %c0_11 = arith.constant 0 : index
    %c0_12 = arith.constant 0 : index
    %c0_13 = arith.constant 0 : index
    %c0_14 = arith.constant 0 : index
    %19 = vector.load %arg7[%c0_11, %c0_12, %c0_13, %c0_14] : memref<1x1x128x2xf32, #tpu.memory_space<vmem>>, vector<1x1x128x1xf32>
    %20 = vector.shape_cast %19 : vector<1x1x128x1xf32> to vector<128x1xf32>
    %21 = vector.shape_cast %18 : vector<128x1xf32> to vector<1x1x128x1xf32>
    tpu.vector_store %arg7[%c0_11, %c0_12, %c0_13, %c0_14], %21 {strides = array<i32>} : memref<1x1x128x2xf32, #tpu.memory_space<vmem>>, vector<1x1x128x1xf32>,
    %22 = arith.mulf %16, %16 : vector<128x64xf32>
    %cst_15 = arith.constant dense<0.000000e+00> : vector<128xf32>
    %23 = vector.multi_reduction <add>, %22, %cst_15 [1] : vector<128x64xf32> to vector<128xf32>
    %24 = vector.shape_cast %23 : vector<128xf32> to vector<128x1xf32>
    %c0_16 = arith.constant 0 : index
    %c0_17 = arith.constant 0 : index
    %c0_18 = arith.constant 0 : index
    %c1 = arith.constant 1 : index
    %25 = vector.load %arg7[%c0_16, %c0_17, %c0_18, %c1] : memref<1x1x128x2xf32, #tpu.memory_space<vmem>>, vector<1x1x128x1xf32>
    %26 = vector.shape_cast %25 : vector<1x1x128x1xf32> to vector<128x1xf32>
    %27 = vector.shape_cast %24 : vector<128x1xf32> to vector<1x1x128x1xf32>
    tpu.vector_store %arg7[%c0_16, %c0_17, %c0_18, %c1], %27 {strides = array<i32>} : memref<1x1x128x2xf32, #tpu.memory_space<vmem>>, vector<1x1x128x1xf32>,
    %28 = arith.truncf %16 : vector<128x64xf32> to vector<128x64xbf16>
    %c0_19 = arith.constant 0 : index
    %c0_20 = arith.constant 0 : index
    %c0_21 = arith.constant 0 : index
    %29 = vector.load %arg6[%c0_19, %c0_20, %c0_21] : memref<1x128x64xbf16, #tpu.memory_space<vmem>>, vector<1x128x64xbf16>
    %30 = vector.shape_cast %29 : vector<1x128x64xbf16> to vector<128x64xbf16>
    %31 = vector.shape_cast %28 : vector<128x64xbf16> to vector<1x128x64xbf16>
    tpu.vector_store %arg6[%c0_19, %c0_20, %c0_21], %31 {strides = array<i32>} : memref<1x128x64xbf16, #tpu.memory_space<vmem>>, vector<1x128x64xbf16>,
    return
  }
  func.func @transform_0(%arg0: i32, %arg1: i32) -> (i32, i32, i32) {
    %c0_i32 = arith.constant 0 : i32
    %c0_i32_0 = arith.constant 0 : i32
    return %arg0, %c0_i32, %arg1 : i32, i32, i32
  }
  func.func @transform_1(%arg0: i32, %arg1: i32) -> (i32, i32) {
    %c0_i32 = arith.constant 0 : i32
    %c0_i32_0 = arith.constant 0 : i32
    %c0_i32_1 = arith.constant 0 : i32
    return %c0_i32, %c0_i32_0 : i32, i32
  }
  func.func @transform_2(%arg0: i32, %arg1: i32) -> (i32, i32) {
    %c0_i32 = arith.constant 0 : i32
    %c0_i32_0 = arith.constant 0 : i32
    %c0_i32_1 = arith.constant 0 : i32
    return %c0_i32, %c0_i32_0 : i32, i32
  }
  func.func @transform_3(%arg0: i32, %arg1: i32) -> (i32, i32) {
    %c0_i32 = arith.constant 0 : i32
    %c0_i32_0 = arith.constant 0 : i32
    %c0_i32_1 = arith.constant 0 : i32
    return %c0_i32, %c0_i32_0 : i32, i32
  }
  func.func @transform_4(%arg0: i32, %arg1: i32) -> (i32, i32, i32) {
    %c0_i32 = arith.constant 0 : i32
    %c0_i32_0 = arith.constant 0 : i32
    return %arg0, %c0_i32, %arg1 : i32, i32, i32
  }
  func.func @transform_5(%arg0: i32, %arg1: i32) -> (i32, i32, i32, i32) {
    %c0_i32 = arith.constant 0 : i32
    %c0_i32_0 = arith.constant 0 : i32
    %c0_i32_1 = arith.constant 0 : i32
    return %arg0, %arg1, %c0_i32, %c0_i32_0 : i32, i32, i32, i32
  }
}

module attributes {stable_mosaic.version = 11 : i64} {
  func.func @_final_kernel(%arg0: i32, %arg1: i32, %arg2: memref<1x128x64xbf16, #tpu.memory_space<vmem>>, %arg3: memref<128x1xf32, #tpu.memory_space<vmem>>, %arg4: memref<128x1xf32, #tpu.memory_space<vmem>>, %arg5: memref<1x128x64xf32, #tpu.memory_space<vmem>>) attributes {dimension_semantics = [#tpu.dimension_semantics<parallel>, #tpu.dimension_semantics<parallel>], iteration_bounds = array<i64: 2, 1>, scalar_prefetch = 0 : i64, scratch_operands = 0 : i64, tpu.core_type = #tpu.core_type<tc>, window_params = [{transform_indices = @transform_0, window_bounds = array<i64: 1, 128, 64>}, {pipeline_mode = #tpu.pipeline_mode<synchronous>, transform_indices = @transform_1, window_bounds = array<i64: 128, 1>}, {pipeline_mode = #tpu.pipeline_mode<synchronous>, transform_indices = @transform_2, window_bounds = array<i64: 128, 1>}, {transform_indices = @transform_3, window_bounds = array<i64: 1, 128, 64>}]} {
    %c0 = arith.constant 0 : index
    %c0_0 = arith.constant 0 : index
    %c0_1 = arith.constant 0 : index
    %0 = vector.load %arg2[%c0, %c0_0, %c0_1] : memref<1x128x64xbf16, #tpu.memory_space<vmem>>, vector<1x128x64xbf16>
    %1 = vector.shape_cast %0 : vector<1x128x64xbf16> to vector<128x64xbf16>
    %2 = arith.extf %1 : vector<128x64xbf16> to vector<128x64xf32>
    %c0_2 = arith.constant 0 : index
    %c0_3 = arith.constant 0 : index
    %3 = vector.load %arg3[%c0_2, %c0_3] : memref<128x1xf32, #tpu.memory_space<vmem>>, vector<128x1xf32>
    %4 = vector.broadcast %3 : vector<128x1xf32> to vector<128x64xf32>
    %5 = arith.mulf %2, %4 : vector<128x64xf32>
    %c0_4 = arith.constant 0 : index
    %c0_5 = arith.constant 0 : index
    %6 = vector.load %arg4[%c0_4, %c0_5] : memref<128x1xf32, #tpu.memory_space<vmem>>, vector<128x1xf32>
    %7 = vector.broadcast %6 : vector<128x1xf32> to vector<128x64xf32>
    %8 = arith.addf %5, %7 : vector<128x64xf32>
    %cst = arith.constant 0.000000e+00 : f32
    %9 = vector.broadcast %cst : f32 to vector<128x64xf32>
    %10 = arith.cmpf ogt, %8, %9 : vector<128x64xf32>
    %cst_6 = arith.constant 2.000000e-01 : f32
    %11 = vector.broadcast %cst_6 : f32 to vector<128x64xf32>
    %12 = arith.mulf %11, %8 : vector<128x64xf32>
    %13 = arith.select %10, %8, %12 : vector<128x64xi1>, vector<128x64xf32>
    %c0_7 = arith.constant 0 : index
    %c0_8 = arith.constant 0 : index
    %c0_9 = arith.constant 0 : index
    %14 = vector.load %arg5[%c0_7, %c0_8, %c0_9] : memref<1x128x64xf32, #tpu.memory_space<vmem>>, vector<1x128x64xf32>
    %15 = vector.shape_cast %14 : vector<1x128x64xf32> to vector<128x64xf32>
    %16 = vector.shape_cast %13 : vector<128x64xf32> to vector<1x128x64xf32>
    tpu.vector_store %arg5[%c0_7, %c0_8, %c0_9], %16 {strides = array<i32>} : memref<1x128x64xf32, #tpu.memory_space<vmem>>, vector<1x128x64xf32>,
    return
  }
  func.func @transform_0(%arg0: i32, %arg1: i32) -> (i32, i32, i32) {
    %c0_i32 = arith.constant 0 : i32
    %c0_i32_0 = arith.constant 0 : i32
    return %arg0, %c0_i32, %arg1 : i32, i32, i32
  }
  func.func @transform_1(%arg0: i32, %arg1: i32) -> (i32, i32) {
    %c0_i32 = arith.constant 0 : i32
    %c0_i32_0 = arith.constant 0 : i32
    %c0_i32_1 = arith.constant 0 : i32
    return %c0_i32, %c0_i32_0 : i32, i32
  }
  func.func @transform_2(%arg0: i32, %arg1: i32) -> (i32, i32) {
    %c0_i32 = arith.constant 0 : i32
    %c0_i32_0 = arith.constant 0 : i32
    %c0_i32_1 = arith.constant 0 : i32
    return %c0_i32, %c0_i32_0 : i32, i32
  }
  func.func @transform_3(%arg0: i32, %arg1: i32) -> (i32, i32, i32) {
    %c0_i32 = arith.constant 0 : i32
    %c0_i32_0 = arith.constant 0 : i32
    return %arg0, %c0_i32, %arg1 : i32, i32, i32
  }
}

</mosaic_0001>

<bundles_post_ra>
// kernel: pointnet_forward.4
= control target key start
LH: loop header
LB: loop body
LE: loop exit
PB: predicated region body
PF: predicated region fallthrough
CT: control target
= control target key end

     0   :  { %s606_s12 = smov 0   ;;  %s608_s13 = smov 0   ;;  %s675_s0 = inlined_call_operand.vmem [shape: f32[2,3,64], index: 0, kind: input, shape index: {}]   ;;  %s676_s1 = inlined_call_operand.vmem [shape: f32[32,3], index: 1, kind: input, shape index: {}]   ;;  %s677_s2 = inlined_call_operand.vmem [shape: bf16[2,32,64], index: 2, kind: output, shape index: {0}]   ;;  %s678_s3 = inlined_call_operand.vmem [shape: f32[2,1,32,2], index: 3, kind: output, shape index: {1}]  }
   0x1   :  { %s610_s14 = smov 0  }
   0x2 LB: > { %s26_s15 = sadd.s32 1, %s577_s13  ;;  %p508_p0 = scmp.ge.s32.totalorder %s581_s14, 1  ;;  %s581_s14 = sphi %s610_s14, %s14_s14   ;;  %s577_s13 = sphi %s608_s13, %s680_s13   ;;  %s573_s12 = sphi %s606_s12, %s679_s12  }
   0x3   : > { %p28_p1 = scmp.ge.s32.totalorder %s26_s15, 2  ;;  %p160_p2 = scmp.lt.s32.totalorder %s581_s14, 3 }
   0x5   : > { %s682_s15 = smov (%p28_p1, %s26_s15), 0  ;;  %p161_p3 = pnand %p508_p0, %p160_p2 }
   0x6   : > { %v225_v0 = vld [vmem:[%s676_s1 + $0x10] sm:$0xff] (!%p161_p3)  ;;  %v223_v1 = vld [vmem:[%s676_s1] sm:$0xff] (!%p161_p3)  ;;  %v583_v2 = vmov (!%p161_p3), 0   ;;  %v226_v3 = vld [vmem:[%s676_s1 + $0x18] sm:$0xff] (!%p161_p3)  ;;  %v584_v5 = vmov (!%p161_p3), 1   ;;  %v585_v6 = vmov (!%p161_p3), 2   ;;  %v247_v9 = vlaneseq (!%p161_p3) }
   0x7   : > { %164 = sbr.rel (%p161_p3) target bundleno = 319 (0x13f), region = 28  ;;  %554 = vset.pattern.permute.xlu1 (!%p161_p3), %v583_v2  ;;  %553 = vset.pattern.permute.xlu0 (!%p161_p3), %v583_v2  ;;  %v224_v4 = vld [vmem:[%s676_s1 + $0x8] sm:$0xff] (!%p161_p3)  ;;  %p198_p4 = scmp.lt.s32.totalorder (!%p161_p3), %s573_s12, 1  ;;  %vm311_vm0 = vcmask (!%p161_p3), 523264   ;;  %vm366_vm1 = vcmask (!%p161_p3), 519168   ;;  %vm324_vm2 = vcmask (!%p161_p3), 7168  }
   0x8   : > { %239 = vperm.xlu1 (!%p161_p3), %554, %v225_v0   ;;  %229 = vperm.xlu0 (!%p161_p3), %553, %v223_v1   ;;  %v248_v12 = vshrl.u32 (!%p161_p3), %v247_v9, 7  ;;  %vm345_vm3 = vcmask (!%p161_p3), 15368  }
   0xa   : > { %v273_v13 = vsub.s32 (!%p161_p3), 1, %v248_v12  ;;  %v249_v17 = vsub.s32 (!%p161_p3), 0, %v248_v12  ;;  %v301_v19 = vsub.s32 (!%p161_p3), 2, %v248_v12 }
   0xc   : > { %244 = vperm.xlu1 (!%p161_p3), %554, %v226_v3   ;;  %234 = vperm.xlu0 (!%p161_p3), %553, %v224_v4  }
   0xe   : > { %s684_s12 = smov (!%p198_p4, %s573_s12), 1 }
   0xf   : > { %s509_s24 = sshll.u32 %s684_s12, 2  ;;  %s520_s28 = sshll.u32 %s684_s12, 4 }
  0x10   : > { %556 = vset.pattern.permute.xlu1 %v584_v5  ;;  %555 = vset.pattern.permute.xlu0 %v584_v5  ;;  %s204_s27 = scalar_lea.vmem %s675_s0, %s509_s24  ;;  %s212_s4 = scalar_lea.vmem %s677_s2, %s520_s28 }
  0x11   : > { %260 = vperm.xlu1 %556, %v224_v4   ;;  %256 = vperm.xlu0 %555, %v223_v1   ;;  %v222_v16 = vld [vmem:[%s204_s27] sm:$0x7]  ;;  %s521_s5 = sshll.u32 %s684_s12, 5 }
  0x12   : > { %v274_v18 = vrot.slane %v222_v16, %v273_v13  ;;  %v250_v22 = vrot.slane %v222_v16, %v249_v17  ;;  %v302_v25 = vrot.slane %v222_v16, %v301_v19  ;;  %s221_s8 = scalar_lea.vmem %s678_s3, %s521_s5 }
  0x15   : > { %264 = vperm.xlu1 %556, %v225_v0   ;;  %268 = vperm.xlu0 %555, %v226_v3  }
  0x19   : > { %557 = vset.pattern.permute.xlu1 %v585_v6  ;;  %558 = vset.pattern.permute.xlu0 %v585_v6 }
  0x1a   : > { %284 = vperm.xlu1 %557, %v223_v1   ;;  %288 = vperm.xlu0 %558, %v224_v4  }
  0x1e   : > { %292 = vperm.xlu1 %557, %v225_v0  }
  0x22   : > { %296 = vperm.xlu1 %557, %v226_v3  }
  0x87   : > { %v240_v7 = vpop.permute.xlu1 %239  ;;  %v230_v8 = vpop.permute.xlu0 %229 }
  0x88   : > { %v251_v26 = vmul.f32 %v250_v22, %v230_v8  ;;  %v253_v35 = vmul.f32 %v250_v22, %v240_v7 }
  0x8b   : > { %v245_v10 = vpop.permute.xlu1 %244  ;;  %v235_v11 = vpop.permute.xlu0 %234 }
  0x8c   : > { %v252_v27 = vmul.f32 %v250_v22, %v235_v11  ;;  %v254_v45 = vmul.f32 %v250_v22, %v245_v10 }
  0x90   : > { %v261_v14 = vpop.permute.xlu1 %260  ;;  %v257_v15 = vpop.permute.xlu0 %256 }
  0x91   : > { %v276_v23 = vmul.f32 %v274_v18, %v261_v14  ;;  %v275_v24 = vmul.f32 %v274_v18, %v257_v15 }
  0x93   : > { %v280_v31 = vadd.f32 %v276_v23, %v252_v27  ;;  %v279_v32 = vadd.f32 %v275_v24, %v251_v26 }
  0x94   : > { %v265_v20 = vpop.permute.xlu1 %264  ;;  %v269_v21 = vpop.permute.xlu0 %268 }
  0x95   : > { %v277_v28 = vmul.f32 %v274_v18, %v265_v20  ;;  %v278_v39 = vmul.f32 %v274_v18, %v269_v21 }
  0x97   : > { %v281_v38 = vadd.f32 %v277_v28, %v253_v35  ;;  %v282_v49 = vadd.f32 %v278_v39, %v254_v45 }
  0x99   : > { %v285_v29 = vpop.permute.xlu1 %284  ;;  %v289_v30 = vpop.permute.xlu0 %288 }
  0x9a   : > { %v303_v33 = vmul.f32 %v302_v25, %v285_v29  ;;  %v304_v34 = vmul.f32 %v302_v25, %v289_v30 }
  0x9c   : > { %v307_v36 = vadd.f32 %v303_v33, %v279_v32  ;;  %v308_v37 = vadd.f32 %v304_v34, %v280_v31 }
  0x9d   : > { %v293_v40 = vpop.permute.xlu1 %292 }
  0x9e   : > { %v522_v41 = vpack.c.bf16 %v307_v36, %v307_v36  ;;  %v523_v42 = vpack.c.bf16 %v308_v37, %v308_v37  ;;  %v305_v43 = vmul.f32 %v302_v25, %v293_v40  ;;  %v315_v44 = vsel %vm311_vm0, %v308_v37, 0.0 }
  0x9f   : > { %316 = vadd.xlane.f32.xlu1 %v315_v44  ;;  %v312_v46 = vsel %vm311_vm0, %v307_v36, 0.0  ;;  %v329_v47 = vmul.f32 %v307_v36, %v307_v36  ;;  %v330_v60 = vmul.f32 %v308_v37, %v308_v37 }
  0xa0   : > { %367 = vst.msk [vmem:[%s212_s4] sm:$0xf] %vm366_vm1, %v522_v41  ;;  %368 = vst.msk [vmem:[%s212_s4 + $0x4] sm:$0xf] %vm366_vm1, %v523_v42  ;;  %v309_v48 = vadd.f32 %v305_v43, %v281_v38  ;;  %313 = vadd.xlane.f32.xlu0 %v312_v46 }
  0xa1   : > { %v297_v50 = vpop.permute.xlu1 %296  ;;  %v333_v51 = vsel %vm311_vm0, %v329_v47, 0.0  ;;  %v336_v61 = vsel %vm311_vm0, %v330_v60, 0.0 }
  0xa2   : > { %v524_v52 = vpack.c.bf16 %v309_v48, %v309_v48  ;;  %v306_v53 = vmul.f32 %v302_v25, %v297_v50  ;;  %v318_v54 = vsel %vm311_vm0, %v309_v48, 0.0  ;;  %v331_v55 = vmul.f32 %v309_v48, %v309_v48 }
  0xa3   : > { %334 = vadd.xlane.f32.xlu1 %v333_v51 }
  0xa4   : > { %369 = vst.msk [vmem:[%s212_s4 + $0x8] sm:$0xf] %vm366_vm1, %v524_v52  ;;  %v310_v56 = vadd.f32 %v306_v53, %v282_v49  ;;  %319 = vadd.xlane.f32.xlu0 %v318_v54  ;;  %v339_v58 = vsel %vm311_vm0, %v331_v55, 0.0 }
  0xa6   : > { %v525_v57 = vpack.c.bf16 %v310_v56, %v310_v56  ;;  %v321_v59 = vsel %vm311_vm0, %v310_v56, 0.0  ;;  %v332_v62 = vmul.f32 %v310_v56, %v310_v56 }
  0xa7   : > { %340 = vadd.xlane.f32.xlu1 %v339_v58 }
  0xa8   : > { %370 = vst.msk [vmem:[%s212_s4 + $0xc] sm:$0xf] %vm366_vm1, %v525_v57  ;;  %322 = vadd.xlane.f32.xlu0 %v321_v59  ;;  %v342_v63 = vsel %vm311_vm0, %v332_v62, 0.0 }
  0xac   : > { %337 = vadd.xlane.f32.xlu0 %v336_v61 }
  0xb0   : > { %343 = vadd.xlane.f32.xlu0 %v342_v63 }
 0x12c   : > { %v317_v0 = vpop.xlane.xlu1 %316 }
 0x12d   : > { %326 = vst.msk [vmem:[%s221_s8 + $0x8] sm:$0xff] %vm324_vm2, %v317_v0  ;;  %v314_v1 = vpop.xlane.xlu0 %313 }
 0x12e   : > { %325 = vst.msk [vmem:[%s221_s8] sm:$0xff] %vm324_vm2, %v314_v1 }
 0x130   : > { %v335_v2 = vpop.xlane.xlu1 %334 }
 0x131   : > { %346 = vst.msk [vmem:[%s221_s8] sm:$0xff] %vm345_vm3, %v335_v2  ;;  %v320_v3 = vpop.xlane.xlu0 %319 }
 0x132   : > { %327 = vst.msk [vmem:[%s221_s8 + $0x10] sm:$0xff] %vm324_vm2, %v320_v3 }
 0x134   : > { %v341_v4 = vpop.xlane.xlu1 %340 }
 0x135   : > { %348 = vst.msk [vmem:[%s221_s8 + $0x10] sm:$0xff] %vm345_vm3, %v341_v4  ;;  %v323_v5 = vpop.xlane.xlu0 %322 }
 0x136   : > { %328 = vst.msk [vmem:[%s221_s8 + $0x18] sm:$0xff] %vm324_vm2, %v323_v5 }
 0x139   : > { %v338_v6 = vpop.xlane.xlu0 %337 }
 0x13a   : > { %347 = vst.msk [vmem:[%s221_s8 + $0x8] sm:$0xff] %vm345_vm3, %v338_v6 }
 0x13d   : > { %v344_v7 = vpop.xlane.xlu0 %343 }
 0x13e   : > { %349 = vst.msk [vmem:[%s221_s8 + $0x18] sm:$0xff] %vm345_vm3, %v344_v7 }
 0x13f PF: > { %s14_s14 = sadd.s32 1, %s581_s14   ;;  %s679_s12 = smov %s577_s13 }
 0x140   : > { %p11_p5 = scmp.ge.s32.totalorder %s14_s14, 4   ;;  %s680_s13 = smov %s682_s15 }
 0x142   :  { %13 = sbr.rel (!%p11_p5) target bundleno = 2 (0x2), region = 70 }

// kernel: pointnet_forward.5
= control target key start
LH: loop header
LB: loop body
LE: loop exit
PB: predicated region body
PF: predicated region fallthrough
CT: control target
= control target key end

     0   :  { %s873_s18 = smov 0   ;;  %s875_s19 = smov 0   ;;  %s1026_s0 = inlined_call_operand.vmem [shape: bf16[2,32,64], index: 0, kind: input, shape index: {}]   ;;  %s1027_s1 = inlined_call_operand.vmem [shape: f32[32,1], index: 1, kind: input, shape index: {}]   ;;  %s1028_s2 = inlined_call_operand.vmem [shape: f32[32,1], index: 2, kind: input, shape index: {}]   ;;  %s1029_s3 = inlined_call_operand.vmem [shape: bf16[64,32], index: 3, kind: input, shape index: {}]   ;;  %s1030_s4 = inlined_call_operand.vmem [shape: bf16[2,64,64], index: 4, kind: output, shape index: {0}]   ;;  %s1031_s5 = inlined_call_operand.vmem [shape: f32[2,1,64,2], index: 5, kind: output, shape index: {1}]  }
   0x1   :  { %s877_s20 = smov 0  }
   0x2 LB: > { %s28_s21 = sadd.s32 1, %s836_s19  ;;  %p720_p0 = scmp.ge.s32.totalorder %s840_s20, 1  ;;  %s840_s20 = sphi %s877_s20, %s16_s20   ;;  %s836_s19 = sphi %s875_s19, %s1033_s19   ;;  %s832_s18 = sphi %s873_s18, %s1032_s18  }
   0x3   : > { %p30_p1 = scmp.ge.s32.totalorder %s28_s21, 2  ;;  %p211_p2 = scmp.lt.s32.totalorder %s840_s20, 3 }
   0x5   : > { %s1035_s21 = smov (%p30_p1, %s28_s21), 0  ;;  %p212_p3 = pnand %p720_p0, %p211_p2 }
   0x6   : > { %v316_v0 = vld [vmem:[%s1028_s2] sm:$0xff] (!%p212_p3)  ;;  %v842_v2 = vmov (!%p212_p3), 0   ;;  %v317_v3 = vld [vmem:[%s1028_s2 + $0x8] sm:$0xff] (!%p212_p3)  ;;  %v291_v5 = vld [vmem:[%s1027_s1 + $0x18] sm:$0xff] (!%p212_p3)  ;;  %vm386_vm0 = vcmask (!%p212_p3), 261120   ;;  %p254_p4 = scmp.lt.s32.totalorder (!%p212_p3), %s832_s18, 1 }
   0x7   : > { %215 = sbr.rel (%p212_p3) target bundleno = 547 (0x223), region = 36  ;;  %v288_v1 = vld [vmem:[%s1027_s1] sm:$0xff] (!%p212_p3)  ;;  %813 = vset.pattern.permute.xlu1 (!%p212_p3), %v842_v2  ;;  %812 = vset.pattern.permute.xlu0 (!%p212_p3), %v842_v2  ;;  %v289_v4 = vld [vmem:[%s1027_s1 + $0x8] sm:$0xff] (!%p212_p3)  ;;  %v290_v6 = vld [vmem:[%s1027_s1 + $0x10] sm:$0xff] (!%p212_p3)  ;;  %vm464_vm5 = vcmask (!%p212_p3), 523264   ;;  %vm571_vm6 = vcmask (!%p212_p3), 519168  }
   0x8   : > { %322 = vperm.xlu1 (!%p212_p3), %813, %v316_v0   ;;  %294 = vperm.xlu0 (!%p212_p3), %812, %v288_v1   ;;  %v319_v7 = vld [vmem:[%s1028_s2 + $0x18] sm:$0xff] (!%p212_p3)  ;;  %v318_v8 = vld [vmem:[%s1028_s2 + $0x10] sm:$0xff] (!%p212_p3)  ;;  %v814_v9 = vld [vmem:[%s1029_s3] sm:$0xff] (!%p212_p3)   ;;  %vm489_vm7 = vcmask (!%p212_p3), 7168   ;;  %vm530_vm8 = vcmask (!%p212_p3), 15368  }
   0x9   : > { %v815_v10 = vld [vmem:[%s1029_s3 + $0x10] sm:$0xff] (!%p212_p3)   ;;  %775 = vmatprep.mubr.msk.bf16.mxu0 (!%p212_p3), %vm386_vm0, %v814_v9  ;;  %v816_v43 = vld [vmem:[%s1029_s3 + $0x8] sm:$0xff] (!%p212_p3)   ;;  %v817_v44 = vld [vmem:[%s1029_s3 + $0x18] sm:$0xff] (!%p212_p3)  }
   0xa   : > { %779 = vmatprep.mubr.msk.bf16.mxu1 (!%p212_p3), %vm386_vm0, %v815_v10 }
   0xc   : > { %327 = vperm.xlu1 (!%p212_p3), %813, %v317_v3   ;;  %299 = vperm.xlu0 (!%p212_p3), %812, %v289_v4  }
   0xe   : > { %s1037_s18 = smov (!%p254_p4, %s832_s18), 1 }
   0xf   : > { %s745_s17 = sshll.u32 %s1037_s18, 4  ;;  %s746_s29 = sshll.u32 %s1037_s18, 5 }
  0x10   : > { %309 = vperm.xlu1 %813, %v291_v5   ;;  %304 = vperm.xlu0 %812, %v290_v6   ;;  %s261_s24 = scalar_lea.vmem %s1026_s0, %s745_s17  ;;  %s945_s7 = scalar_lea.vmem %s1030_s4, %s746_s29 }
  0x11   : > { %v757_v11 = vld [vmem:[%s261_s24] sm:$0xff]   ;;  %v764_v20 = vld [vmem:[%s261_s24 + $0x8] sm:$0xff]   ;;  %s747_s8 = sshll.u32 %s1037_s18, 6 }
  0x12   : > { %v758_v12 = vunpack.c.l.bf16 %v757_v11  ;;  %v759_v16 = vunpack.c.h.bf16 %v757_v11  ;;  %v763_v24 = vunpack.c.h.bf16 %v764_v20  ;;  %v762_v25 = vunpack.c.l.bf16 %v764_v20  ;;  %s983_s11 = scalar_lea.vmem %s1031_s5, %s747_s8 }
  0x14   : > { %337 = vperm.xlu1 %813, %v319_v7   ;;  %332 = vperm.xlu0 %812, %v318_v8  }
  0x87   : > { %v323_v13 = vpop.permute.xlu1 %322  ;;  %v295_v14 = vpop.permute.xlu0 %294 }
  0x88   : > { %v312_v15 = vmul.f32 %v758_v12, %v295_v14 }
  0x8a   : > { %v340_v17 = vadd.f32 %v323_v13, %v312_v15 }
  0x8b   : > { %v328_v18 = vpop.permute.xlu1 %327  ;;  %v300_v19 = vpop.permute.xlu0 %299 }
  0x8c   : > { %v313_v21 = vmul.f32 %v759_v16, %v300_v19  ;;  %v348_v22 = vmul.f32 0.2, %v340_v17  ;;  %vm344_vm1 = vcmp.gt.f32.partialorder %v340_v17, 0.0 }
  0x8e   : > { %v341_v23 = vadd.f32 %v328_v18, %v313_v21  ;;  %v352_v29 = vsel %vm344_vm1, %v340_v17, %v348_v22 }
  0x8f   : > { %v310_v26 = vpop.permute.xlu1 %309  ;;  %v305_v27 = vpop.permute.xlu0 %304 }
  0x90   : > { %vm345_vm2 = vcmp.gt.f32.partialorder %v341_v23, 0.0  ;;  %v349_v28 = vmul.f32 0.2, %v341_v23  ;;  %v315_v31 = vmul.f32 %v763_v24, %v310_v26  ;;  %v314_v32 = vmul.f32 %v762_v25, %v305_v27 }
  0x92   : > { %v353_v30 = vsel %vm345_vm2, %v341_v23, %v349_v28 }
  0x93   : > { %v338_v33 = vpop.permute.xlu1 %337  ;;  %v333_v34 = vpop.permute.xlu0 %332  ;;  %v364_v35 = vpack.c.bf16 %v353_v30, %v352_v29 }
  0x94   : > { %v343_v36 = vadd.f32 %v338_v33, %v315_v31  ;;  %v342_v37 = vadd.f32 %v333_v34, %v314_v32 }
  0x95   : > { %771 = vmatprep.subr.bf16.mxu0 %v364_v35  ;;  %783 = vmatprep.subr.bf16.mxu1 %v364_v35 }
  0x96   : > { %vm347_vm3 = vcmp.gt.f32.partialorder %v343_v36, 0.0  ;;  %v351_v38 = vmul.f32 0.2, %v343_v36  ;;  %vm346_vm4 = vcmp.gt.f32.partialorder %v342_v37, 0.0  ;;  %v350_v39 = vmul.f32 0.2, %v342_v37  ;;  %772 = vmatpush3.bf16.msra.mxu0 %v364_v35  ;;  %785 = vmatpush3.bf16.msra.mxu1 %v364_v35 }
  0x98   : > { %v355_v40 = vsel %vm347_vm3, %v343_v36, %v351_v38  ;;  %v354_v41 = vsel %vm346_vm4, %v342_v37, %v350_v39 }
  0x99   : > { %v365_v42 = vpack.c.bf16 %v355_v40, %v354_v41 }
  0x9b   : > { %773 = vmatprep.subr.bf16.mxu0 %v365_v42  ;;  %784 = vmatprep.subr.bf16.mxu1 %v365_v42 }
  0x9c   : > { %774 = vmatpush3.bf16.msra.mxu0 %v365_v42  ;;  %786 = vmatpush3.bf16.msra.mxu1 %v365_v42 }
  0x9f   : > { %776 = vmatmul.mubr.msk.bf16.vlgmr.msra.gmra.mrb[0].mxu0 %vm386_vm0, %v816_v43  ;;  %780 = vmatmul.mubr.msk.bf16.vlgmr.msra.gmra.mrb[0].mxu1 %vm386_vm0, %v817_v44 }
 0x172   : > { %v777_v45 = vpop.f32.mrb[0].mxu0  ;;  %v781_v46 = vpop.f32.mrb[0].mxu1 }
 0x173   : > { %v750_v47 = vpack.c.bf16 %v777_v45, %v777_v45  ;;  %v754_v48 = vpack.c.bf16 %v781_v46, %v781_v46  ;;  %v433_v49 = vpop.f32.mrb[1].mxu0  ;;  %v483_v50 = vsel %vm464_vm5, %v781_v46, 0.0  ;;  %v471_v51 = vsel %vm464_vm5, %v777_v45, 0.0  ;;  %v449_v52 = vpop.f32.mrb[1].mxu1 }
 0x174   : > { %v748_v53 = vpack.c.bf16 %v433_v49, %v433_v49  ;;  %484 = vadd.xlane.f32.xlu1 %v483_v50  ;;  %472 = vadd.xlane.f32.xlu0 %v471_v51  ;;  %v778_v54 = vpop.f32.mrb[2].mxu0  ;;  %v752_v55 = vpack.c.bf16 %v449_v52, %v449_v52  ;;  %v782_v56 = vpop.f32.mrb[2].mxu1  ;;  %v477_v59 = vsel %vm464_vm5, %v449_v52, 0.0  ;;  %v465_v0 = vsel %vm464_vm5, %v433_v49, 0.0 }
 0x175   : > { %574 = vst.msk [vmem:[%s945_s7 + $0x8] sm:$0xf] %vm571_vm6, %v750_v47  ;;  %578 = vst.msk [vmem:[%s945_s7 + $0x18] sm:$0xf] %vm571_vm6, %v754_v48  ;;  %v751_v57 = vpack.c.bf16 %v778_v54, %v778_v54  ;;  %v436_v58 = vpop.f32.mrb[3].mxu0  ;;  %v755_v60 = vpack.c.bf16 %v782_v56, %v782_v56  ;;  %v452_v61 = vpop.f32.mrb[3].mxu1  ;;  %v500_v1 = vmul.f32 %v777_v45, %v777_v45 }
 0x176   : > { %572 = vst.msk [vmem:[%s945_s7] sm:$0xf] %vm571_vm6, %v748_v53  ;;  %v749_v62 = vpack.c.bf16 %v436_v58, %v436_v58  ;;  %576 = vst.msk [vmem:[%s945_s7 + $0x10] sm:$0xf] %vm571_vm6, %v752_v55  ;;  %v753_v63 = vpack.c.bf16 %v452_v61, %v452_v61  ;;  %v474_v3 = vsel %vm464_vm5, %v778_v54, 0.0  ;;  %v486_v4 = vsel %vm464_vm5, %v782_v56, 0.0 }
 0x177   : > { %575 = vst.msk [vmem:[%s945_s7 + $0xc] sm:$0xf] %vm571_vm6, %v751_v57  ;;  %579 = vst.msk [vmem:[%s945_s7 + $0x1c] sm:$0xf] %vm571_vm6, %v755_v60  ;;  %v512_v2 = vsel %vm464_vm5, %v500_v1, 0.0  ;;  %v468_v5 = vsel %vm464_vm5, %v436_v58, 0.0  ;;  %v498_v6 = vmul.f32 %v433_v49, %v433_v49  ;;  %v501_v9 = vmul.f32 %v778_v54, %v778_v54 }
 0x178   : > { %573 = vst.msk [vmem:[%s945_s7 + $0x4] sm:$0xf] %vm571_vm6, %v749_v62  ;;  %478 = vadd.xlane.f32.xlu1 %v477_v59  ;;  %466 = vadd.xlane.f32.xlu0 %v465_v0  ;;  %577 = vst.msk [vmem:[%s945_s7 + $0x14] sm:$0xf] %vm571_vm6, %v753_v63  ;;  %v480_v7 = vsel %vm464_vm5, %v452_v61, 0.0  ;;  %v502_v10 = vmul.f32 %v449_v52, %v449_v52  ;;  %v499_v11 = vmul.f32 %v436_v58, %v436_v58 }
 0x179   : > { %v506_v8 = vsel %vm464_vm5, %v498_v6, 0.0  ;;  %v515_v12 = vsel %vm464_vm5, %v501_v9, 0.0  ;;  %v504_v14 = vmul.f32 %v781_v46, %v781_v46  ;;  %v503_v15 = vmul.f32 %v452_v61, %v452_v61 }
 0x17a   : > { %v518_v13 = vsel %vm464_vm5, %v502_v10, 0.0  ;;  %v509_v16 = vsel %vm464_vm5, %v499_v11, 0.0  ;;  %v505_v19 = vmul.f32 %v782_v56, %v782_v56 }
 0x17b   : > { %v524_v17 = vsel %vm464_vm5, %v504_v14, 0.0  ;;  %v521_v18 = vsel %vm464_vm5, %v503_v15, 0.0 }
 0x17c   : > { %513 = vadd.xlane.f32.xlu1 %v512_v2  ;;  %475 = vadd.xlane.f32.xlu0 %v474_v3  ;;  %v527_v20 = vsel %vm464_vm5, %v505_v19, 0.0 }
 0x180   : > { %487 = vadd.xlane.f32.xlu0 %v486_v4  ;;  %469 = vadd.xlane.f32.xlu1 %v468_v5 }
 0x184   : > { %481 = vadd.xlane.f32.xlu0 %v480_v7  ;;  %507 = vadd.xlane.f32.xlu1 %v506_v8 }
 0x188   : > { %516 = vadd.xlane.f32.xlu0 %v515_v12  ;;  %519 = vadd.xlane.f32.xlu1 %v518_v13 }
 0x18c   : > { %510 = vadd.xlane.f32.xlu0 %v509_v16  ;;  %525 = vadd.xlane.f32.xlu1 %v524_v17 }
 0x190   : > { %522 = vadd.xlane.f32.xlu0 %v521_v18 }
 0x194   : > { %528 = vadd.xlane.f32.xlu0 %v527_v20 }
 0x201   : > { %v485_v21 = vpop.xlane.xlu1 %484  ;;  %v473_v22 = vpop.xlane.xlu0 %472 }
 0x202   : > { %496 = vst.msk [vmem:[%s983_s11 + $0x30] sm:$0xff] %vm489_vm7, %v485_v21  ;;  %492 = vst.msk [vmem:[%s983_s11 + $0x10] sm:$0xff] %vm489_vm7, %v473_v22 }
 0x205   : > { %v479_v23 = vpop.xlane.xlu1 %478  ;;  %v467_v24 = vpop.xlane.xlu0 %466 }
 0x206   : > { %494 = vst.msk [vmem:[%s983_s11 + $0x20] sm:$0xff] %vm489_vm7, %v479_v23  ;;  %490 = vst.msk [vmem:[%s983_s11] sm:$0xff] %vm489_vm7, %v467_v24 }
 0x209   : > { %v514_v25 = vpop.xlane.xlu1 %513  ;;  %v476_v26 = vpop.xlane.xlu0 %475 }
 0x20a   : > { %533 = vst.msk [vmem:[%s983_s11 + $0x10] sm:$0xff] %vm530_vm8, %v514_v25 }
 0x20b   : > { %493 = vst.msk [vmem:[%s983_s11 + $0x18] sm:$0xff] %vm489_vm7, %v476_v26 }
 0x20d   : > { %v488_v27 = vpop.xlane.xlu0 %487  ;;  %v470_v28 = vpop.xlane.xlu1 %469 }
 0x20e   : > { %497 = vst.msk [vmem:[%s983_s11 + $0x38] sm:$0xff] %vm489_vm7, %v488_v27  ;;  %491 = vst.msk [vmem:[%s983_s11 + $0x8] sm:$0xff] %vm489_vm7, %v470_v28 }
 0x211   : > { %v482_v29 = vpop.xlane.xlu0 %481  ;;  %v508_v30 = vpop.xlane.xlu1 %507 }
 0x212   : > { %495 = vst.msk [vmem:[%s983_s11 + $0x28] sm:$0xff] %vm489_vm7, %v482_v29 }
 0x213   : > { %531 = vst.msk [vmem:[%s983_s11] sm:$0xff] %vm530_vm8, %v508_v30 }
 0x215   : > { %v517_v31 = vpop.xlane.xlu0 %516  ;;  %v520_v32 = vpop.xlane.xlu1 %519 }
 0x216   : > { %534 = vst.msk [vmem:[%s983_s11 + $0x18] sm:$0xff] %vm530_vm8, %v517_v31  ;;  %535 = vst.msk [vmem:[%s983_s11 + $0x20] sm:$0xff] %vm530_vm8, %v520_v32 }
 0x219   : > { %v511_v33 = vpop.xlane.xlu0 %510  ;;  %v526_v34 = vpop.xlane.xlu1 %525 }
 0x21a   : > { %532 = vst.msk [vmem:[%s983_s11 + $0x8] sm:$0xff] %vm530_vm8, %v511_v33  ;;  %537 = vst.msk [vmem:[%s983_s11 + $0x30] sm:$0xff] %vm530_vm8, %v526_v34 }
 0x21d   : > { %v523_v35 = vpop.xlane.xlu0 %522 }
 0x21e   : > { %536 = vst.msk [vmem:[%s983_s11 + $0x28] sm:$0xff] %vm530_vm8, %v523_v35 }
 0x221   : > { %v529_v36 = vpop.xlane.xlu0 %528 }
 0x222   : > { %538 = vst.msk [vmem:[%s983_s11 + $0x38] sm:$0xff] %vm530_vm8, %v529_v36 }
 0x223 PF: > { %s16_s20 = sadd.s32 1, %s840_s20   ;;  %s1032_s18 = smov %s836_s19 }
 0x224   : > { %p13_p5 = scmp.ge.s32.totalorder %s16_s20, 4   ;;  %s1033_s19 = smov %s1035_s21 }
 0x226   :  { %15 = sbr.rel (!%p13_p5) target bundleno = 2 (0x2), region = 78 }

// kernel: pointnet_forward.6
= control target key start
LH: loop header
LB: loop body
LE: loop exit
PB: predicated region body
PF: predicated region fallthrough
CT: control target
= control target key end

     0   :  { %s1194_s18 = smov 0   ;;  %s1196_s19 = smov 0   ;;  %s1534_s0 = inlined_call_operand.vmem [shape: bf16[2,64,64], index: 0, kind: input, shape index: {}]   ;;  %s1535_s1 = inlined_call_operand.vmem [shape: f32[64,1], index: 1, kind: input, shape index: {}]   ;;  %s1536_s2 = inlined_call_operand.vmem [shape: f32[64,1], index: 2, kind: input, shape index: {}]   ;;  %s1537_s3 = inlined_call_operand.vmem [shape: bf16[128,64], index: 3, kind: input, shape index: {}]   ;;  %s1538_s4 = inlined_call_operand.vmem [shape: bf16[2,128,64], index: 4, kind: output, shape index: {0}]   ;;  %s1539_s5 = inlined_call_operand.vmem [shape: f32[2,1,128,2], index: 5, kind: output, shape index: {1}]  }
   0x1   :  { %s1198_s20 = smov 0  }
   0x2 LB: > { %s28_s21 = sadd.s32 1, %s1157_s19  ;;  %p981_p0 = scmp.ge.s32.totalorder %s1161_s20, 1  ;;  %s1161_s20 = sphi %s1198_s20, %s16_s20   ;;  %s1157_s19 = sphi %s1196_s19, %s1541_s19   ;;  %s1153_s18 = sphi %s1194_s18, %s1540_s18  }
   0x3   : > { %p30_p1 = scmp.ge.s32.totalorder %s28_s21, 2  ;;  %p211_p2 = scmp.lt.s32.totalorder %s1161_s20, 3 }
   0x5   : > { %s1543_s21 = smov (%p30_p1, %s28_s21), 0  ;;  %p212_p3 = pnand %p981_p0, %p211_p2 }
   0x6   : > { %v352_v0 = vld [vmem:[%s1536_s2] sm:$0xff] (!%p212_p3)  ;;  %v1163_v2 = vmov (!%p212_p3), 0   ;;  %v353_v3 = vld [vmem:[%s1536_s2 + $0x8] sm:$0xff] (!%p212_p3)  ;;  %v299_v5 = vld [vmem:[%s1535_s1 + $0x18] sm:$0xff] (!%p212_p3)  ;;  %vm492_vm0 = vcmask (!%p212_p3), 523264   ;;  %p254_p4 = scmp.lt.s32.totalorder (!%p212_p3), %s1153_s18, 1 }
   0x7   : > { %215 = sbr.rel (%p212_p3) target bundleno = 595 (0x253), region = 36  ;;  %v296_v1 = vld [vmem:[%s1535_s1] sm:$0xff] (!%p212_p3)  ;;  %1130 = vset.pattern.permute.xlu1 (!%p212_p3), %v1163_v2  ;;  %1129 = vset.pattern.permute.xlu0 (!%p212_p3), %v1163_v2  ;;  %v297_v4 = vld [vmem:[%s1535_s1 + $0x8] sm:$0xff] (!%p212_p3)  ;;  %v298_v6 = vld [vmem:[%s1535_s1 + $0x10] sm:$0xff] (!%p212_p3)  ;;  %vm824_vm9 = vcmask (!%p212_p3), 519168   ;;  %vm662_vm10 = vcmask (!%p212_p3), 7168  }
   0x8   : > { %362 = vperm.xlu1 (!%p212_p3), %1130, %v352_v0   ;;  %306 = vperm.xlu0 (!%p212_p3), %1129, %v296_v1   ;;  %v355_v7 = vld [vmem:[%s1536_s2 + $0x18] sm:$0xff] (!%p212_p3)  ;;  %v354_v8 = vld [vmem:[%s1536_s2 + $0x10] sm:$0xff] (!%p212_p3)  ;;  %v301_v9 = vld [vmem:[%s1535_s1 + $0x28] sm:$0xff] (!%p212_p3)  ;;  %vm743_vm11 = vcmask (!%p212_p3), 15368  }
   0x9   : > { %v300_v10 = vld [vmem:[%s1535_s1 + $0x20] sm:$0xff] (!%p212_p3)  ;;  %v357_v11 = vld [vmem:[%s1536_s2 + $0x28] sm:$0xff] (!%p212_p3)  ;;  %v303_v13 = vld [vmem:[%s1535_s1 + $0x38] sm:$0xff] (!%p212_p3) }
   0xa   : > { %v356_v12 = vld [vmem:[%s1536_s2 + $0x20] sm:$0xff] (!%p212_p3)  ;;  %v302_v14 = vld [vmem:[%s1535_s1 + $0x30] sm:$0xff] (!%p212_p3)  ;;  %v359_v15 = vld [vmem:[%s1536_s2 + $0x38] sm:$0xff] (!%p212_p3) }
   0xb   : > { %v358_v16 = vld [vmem:[%s1536_s2 + $0x30] sm:$0xff] (!%p212_p3)  ;;  %v1131_v17 = vld [vmem:[%s1537_s3] sm:$0xff] (!%p212_p3)  }
   0xc   : > { %367 = vperm.xlu1 (!%p212_p3), %1130, %v353_v3   ;;  %311 = vperm.xlu0 (!%p212_p3), %1129, %v297_v4   ;;  %v1132_v18 = vld [vmem:[%s1537_s3 + $0x20] sm:$0xff] (!%p212_p3)  }
   0xd   : > { %1080 = vmatprep.mubr.msk.bf16.mxu0 (!%p212_p3), %vm492_vm0, %v1131_v17  ;;  %1088 = vmatprep.mubr.msk.bf16.mxu1 (!%p212_p3), %vm492_vm0, %v1132_v18 }
   0xe   : > { %s1545_s18 = smov (!%p254_p4, %s1153_s18), 1 }
   0xf   : > { %s1022_s12 = sshll.u32 %s1545_s18, 5  ;;  %s1023_s7 = sshll.u32 %s1545_s18, 6 }
  0x10   : > { %321 = vperm.xlu1 %1130, %v299_v5   ;;  %316 = vperm.xlu0 %1129, %v298_v6   ;;  %s1278_s15 = scalar_lea.vmem %s1534_s0, %s1022_s12  ;;  %s1312_s10 = scalar_lea.vmem %s1538_s4, %s1023_s7 }
  0x11   : > { %v1042_v19 = vld [vmem:[%s1278_s15] sm:$0xff]   ;;  %v1057_v28 = vld [vmem:[%s1278_s15 + $0x8] sm:$0xff]   ;;  %v1058_v41 = vld [vmem:[%s1278_s15 + $0x10] sm:$0xff]   ;;  %s1024_s11 = sshll.u32 %s1545_s18, 7 }
  0x12   : > { %v1043_v20 = vunpack.c.l.bf16 %v1042_v19  ;;  %v1044_v24 = vunpack.c.h.bf16 %v1042_v19  ;;  %v1048_v32 = vunpack.c.h.bf16 %v1057_v28  ;;  %v1047_v33 = vunpack.c.l.bf16 %v1057_v28  ;;  %v1059_v58 = vld [vmem:[%s1278_s15 + $0x18] sm:$0xff]   ;;  %v1133_v19 = vld [vmem:[%s1537_s3 + $0x8] sm:$0xff]   ;;  %s1459_s14 = scalar_lea.vmem %s1539_s5, %s1024_s11 }
  0x13   : > { %v1052_v47 = vunpack.c.h.bf16 %v1058_v41  ;;  %v1051_v48 = vunpack.c.l.bf16 %v1058_v41  ;;  %v1056_v63 = vunpack.c.h.bf16 %v1059_v58  ;;  %v1055_v0 = vunpack.c.l.bf16 %v1059_v58 }
  0x14   : > { %377 = vperm.xlu1 %1130, %v355_v7   ;;  %372 = vperm.xlu0 %1129, %v354_v8  }
  0x18   : > { %331 = vperm.xlu1 %1130, %v301_v9   ;;  %326 = vperm.xlu0 %1129, %v300_v10  }
  0x1c   : > { %387 = vperm.xlu1 %1130, %v357_v11   ;;  %382 = vperm.xlu0 %1129, %v356_v12  }
  0x20   : > { %341 = vperm.xlu1 %1130, %v303_v13   ;;  %336 = vperm.xlu0 %1129, %v302_v14  }
  0x24   : > { %397 = vperm.xlu1 %1130, %v359_v15   ;;  %392 = vperm.xlu0 %1129, %v358_v16  }
  0x87   : > { %v363_v21 = vpop.permute.xlu1 %362  ;;  %v307_v22 = vpop.permute.xlu0 %306 }
  0x88   : > { %v344_v23 = vmul.f32 %v1043_v20, %v307_v22  ;;  %v1134_v20 = vld [vmem:[%s1537_s3 + $0x28] sm:$0xff]   ;;  %v1137_v22 = vld [vmem:[%s1537_s3 + $0x30] sm:$0xff]  }
  0x8a   : > { %v400_v25 = vadd.f32 %v363_v21, %v344_v23  ;;  %v1135_v21 = vld [vmem:[%s1537_s3 + $0x10] sm:$0xff]   ;;  %v1136_v23 = vld [vmem:[%s1537_s3 + $0x18] sm:$0xff]  }
  0x8b   : > { %v368_v26 = vpop.permute.xlu1 %367  ;;  %v312_v27 = vpop.permute.xlu0 %311 }
  0x8c   : > { %v345_v29 = vmul.f32 %v1044_v24, %v312_v27  ;;  %v416_v30 = vmul.f32 0.2, %v400_v25  ;;  %vm408_vm1 = vcmp.gt.f32.partialorder %v400_v25, 0.0  ;;  %v1138_v24 = vld [vmem:[%s1537_s3 + $0x38] sm:$0xff]  }
  0x8e   : > { %v401_v31 = vadd.f32 %v368_v26, %v345_v29  ;;  %v424_v37 = vsel %vm408_vm1, %v400_v25, %v416_v30 }
  0x8f   : > { %v322_v34 = vpop.permute.xlu1 %321  ;;  %v317_v35 = vpop.permute.xlu0 %316 }
  0x90   : > { %vm409_vm2 = vcmp.gt.f32.partialorder %v401_v31, 0.0  ;;  %v417_v36 = vmul.f32 0.2, %v401_v31  ;;  %v347_v39 = vmul.f32 %v1048_v32, %v322_v34  ;;  %v346_v40 = vmul.f32 %v1047_v33, %v317_v35 }
  0x92   : > { %v425_v38 = vsel %vm409_vm2, %v401_v31, %v417_v36 }
  0x93   : > { %v378_v42 = vpop.permute.xlu1 %377  ;;  %v373_v43 = vpop.permute.xlu0 %372  ;;  %v448_v44 = vpack.c.bf16 %v425_v38, %v424_v37 }
  0x94   : > { %v403_v45 = vadd.f32 %v378_v42, %v347_v39  ;;  %v402_v46 = vadd.f32 %v373_v43, %v346_v40 }
  0x95   : > { %1072 = vmatprep.subr.bf16.mxu0 %v448_v44  ;;  %1096 = vmatprep.subr.bf16.mxu1 %v448_v44 }
  0x96   : > { %vm411_vm3 = vcmp.gt.f32.partialorder %v403_v45, 0.0  ;;  %v419_v49 = vmul.f32 0.2, %v403_v45  ;;  %vm410_vm4 = vcmp.gt.f32.partialorder %v402_v46, 0.0  ;;  %v418_v50 = vmul.f32 0.2, %v402_v46  ;;  %1073 = vmatpush3.bf16.msra.mxu0 %v448_v44  ;;  %1100 = vmatpush3.bf16.msra.mxu1 %v448_v44 }
  0x97   : > { %v332_v51 = vpop.permute.xlu1 %331  ;;  %v327_v52 = vpop.permute.xlu0 %326 }
  0x98   : > { %v427_v53 = vsel %vm411_vm3, %v403_v45, %v419_v49  ;;  %v426_v54 = vsel %vm410_vm4, %v402_v46, %v418_v50  ;;  %v349_v56 = vmul.f32 %v1052_v47, %v332_v51  ;;  %v348_v57 = vmul.f32 %v1051_v48, %v327_v52 }
  0x99   : > { %v449_v55 = vpack.c.bf16 %v427_v53, %v426_v54 }
  0x9b   : > { %v388_v59 = vpop.permute.xlu1 %387  ;;  %v383_v60 = vpop.permute.xlu0 %382  ;;  %1074 = vmatprep.subr.bf16.mxu0 %v449_v55  ;;  %1097 = vmatprep.subr.bf16.mxu1 %v449_v55 }
  0x9c   : > { %v405_v61 = vadd.f32 %v388_v59, %v349_v56  ;;  %v404_v62 = vadd.f32 %v383_v60, %v348_v57  ;;  %1075 = vmatpush3.bf16.msra.mxu0 %v449_v55  ;;  %1101 = vmatpush3.bf16.msra.mxu1 %v449_v55 }
  0x9e   : > { %vm413_vm5 = vcmp.gt.f32.partialorder %v405_v61, 0.0  ;;  %v421_v1 = vmul.f32 0.2, %v405_v61  ;;  %vm412_vm6 = vcmp.gt.f32.partialorder %v404_v62, 0.0  ;;  %v420_v2 = vmul.f32 0.2, %v404_v62 }
  0x9f   : > { %v342_v3 = vpop.permute.xlu1 %341  ;;  %v337_v4 = vpop.permute.xlu0 %336 }
  0xa0   : > { %v429_v5 = vsel %vm413_vm5, %v405_v61, %v421_v1  ;;  %v428_v6 = vsel %vm412_vm6, %v404_v62, %v420_v2  ;;  %v351_v8 = vmul.f32 %v1056_v63, %v342_v3  ;;  %v350_v9 = vmul.f32 %v1055_v0, %v337_v4 }
  0xa1   : > { %v450_v7 = vpack.c.bf16 %v429_v5, %v428_v6 }
  0xa3   : > { %v398_v10 = vpop.permute.xlu1 %397  ;;  %v393_v11 = vpop.permute.xlu0 %392  ;;  %1076 = vmatprep.subr.bf16.mxu0 %v450_v7  ;;  %1098 = vmatprep.subr.bf16.mxu1 %v450_v7 }
  0xa4   : > { %v407_v12 = vadd.f32 %v398_v10, %v351_v8  ;;  %v406_v13 = vadd.f32 %v393_v11, %v350_v9  ;;  %1077 = vmatpush3.bf16.msra.mxu0 %v450_v7  ;;  %1102 = vmatpush3.bf16.msra.mxu1 %v450_v7 }
  0xa6   : > { %vm415_vm7 = vcmp.gt.f32.partialorder %v407_v12, 0.0  ;;  %v423_v14 = vmul.f32 0.2, %v407_v12  ;;  %vm414_vm8 = vcmp.gt.f32.partialorder %v406_v13, 0.0  ;;  %v422_v15 = vmul.f32 0.2, %v406_v13 }
  0xa8   : > { %v431_v16 = vsel %vm415_vm7, %v407_v12, %v423_v14  ;;  %v430_v17 = vsel %vm414_vm8, %v406_v13, %v422_v15 }
  0xa9   : > { %v451_v18 = vpack.c.bf16 %v431_v16, %v430_v17 }
  0xab   : > { %1078 = vmatprep.subr.bf16.mxu0 %v451_v18  ;;  %1099 = vmatprep.subr.bf16.mxu1 %v451_v18 }
  0xac   : > { %1079 = vmatpush3.bf16.msra.mxu0 %v451_v18  ;;  %1103 = vmatpush3.bf16.msra.mxu1 %v451_v18 }
  0xaf   : > { %1081 = vmatmul.mubr.msk.bf16.vlgmr.msra.gmra.mrb[0].mxu0 %vm492_vm0, %v1133_v19  ;;  %1089 = vmatmul.mubr.msk.bf16.vlgmr.msra.gmra.mrb[0].mxu1 %vm492_vm0, %v1134_v20 }
  0xb0   : > { %1084 = vmatprep.mubr.msk.bf16.mxu0 %vm492_vm0, %v1135_v21  ;;  %1092 = vmatprep.mubr.msk.bf16.mxu1 %vm492_vm0, %v1137_v22 }
  0xb7   : > { %1085 = vmatmul.mubr.msk.bf16.gmra.mrb[4].mxu0 %vm492_vm0, %v1136_v23  ;;  %1093 = vmatmul.mubr.msk.bf16.gmra.mrb[4].mxu1 %vm492_vm0, %v1138_v24 }
 0x182   : > { %v1082_v25 = vpop.f32.mrb[0].mxu0  ;;  %v1090_v26 = vpop.f32.mrb[0].mxu1 }
 0x183   : > { %v1027_v27 = vpack.c.bf16 %v1082_v25, %v1082_v25  ;;  %v1035_v28 = vpack.c.bf16 %v1090_v26, %v1090_v26  ;;  %v1314_v29 = vpop.f32.mrb[1].mxu0  ;;  %v644_v30 = vsel %vm492_vm0, %v1090_v26, 0.0  ;;  %v620_v31 = vsel %vm492_vm0, %v1082_v25, 0.0  ;;  %v1318_v32 = vpop.f32.mrb[1].mxu1 }
 0x184   : > { %v1025_v33 = vpack.c.bf16 %v1314_v29, %v1314_v29  ;;  %645 = vadd.xlane.f32.xlu1 %v644_v30  ;;  %621 = vadd.xlane.f32.xlu0 %v620_v31  ;;  %v1083_v34 = vpop.f32.mrb[2].mxu0  ;;  %v1033_v35 = vpack.c.bf16 %v1318_v32, %v1318_v32  ;;  %v1091_v36 = vpop.f32.mrb[2].mxu1  ;;  %v638_v39 = vsel %vm492_vm0, %v1318_v32, 0.0  ;;  %v614_v44 = vsel %vm492_vm0, %v1314_v29, 0.0 }
 0x185   : > { %827 = vst.msk [vmem:[%s1312_s10 + $0x8] sm:$0xf] %vm824_vm9, %v1027_v27  ;;  %835 = vst.msk [vmem:[%s1312_s10 + $0x28] sm:$0xf] %vm824_vm9, %v1035_v28  ;;  %v1028_v37 = vpack.c.bf16 %v1083_v34, %v1083_v34  ;;  %v1328_v38 = vpop.f32.mrb[3].mxu0  ;;  %v1036_v40 = vpack.c.bf16 %v1091_v36, %v1091_v36  ;;  %v1332_v41 = vpop.f32.mrb[3].mxu1  ;;  %v681_v45 = vmul.f32 %v1082_v25, %v1082_v25 }
 0x186   : > { %825 = vst.msk [vmem:[%s1312_s10] sm:$0xf] %vm824_vm9, %v1025_v33  ;;  %v1026_v42 = vpack.c.bf16 %v1328_v38, %v1328_v38  ;;  %833 = vst.msk [vmem:[%s1312_s10 + $0x20] sm:$0xf] %vm824_vm9, %v1033_v35  ;;  %v1034_v43 = vpack.c.bf16 %v1332_v41, %v1332_v41  ;;  %v623_v46 = vsel %vm492_vm0, %v1083_v34, 0.0  ;;  %v689_v50 = vmul.f32 %v1090_v26, %v1090_v26 }
 0x187   : > { %828 = vst.msk [vmem:[%s1312_s10 + $0xc] sm:$0xf] %vm824_vm9, %v1028_v37  ;;  %836 = vst.msk [vmem:[%s1312_s10 + $0x2c] sm:$0xf] %vm824_vm9, %v1036_v40  ;;  %v701_v49 = vsel %vm492_vm0, %v681_v45, 0.0  ;;  %v647_v2 = vsel %vm492_vm0, %v1091_v36, 0.0  ;;  %v682_v5 = vmul.f32 %v1083_v34, %v1083_v34  ;;  %v679_v6 = vmul.f32 %v1314_v29, %v1314_v29 }
 0x188   : > { %826 = vst.msk [vmem:[%s1312_s10 + $0x4] sm:$0xf] %vm824_vm9, %v1026_v42  ;;  %639 = vadd.xlane.f32.xlu1 %v638_v39  ;;  %615 = vadd.xlane.f32.xlu0 %v614_v44  ;;  %834 = vst.msk [vmem:[%s1312_s10 + $0x24] sm:$0xf] %vm824_vm9, %v1034_v43  ;;  %v725_v1 = vsel %vm492_vm0, %v689_v50, 0.0  ;;  %v641_v3 = vsel %vm492_vm0, %v1332_v41, 0.0  ;;  %v690_v9 = vmul.f32 %v1091_v36, %v1091_v36 }
 0x189   : > { %v617_v4 = vsel %vm492_vm0, %v1328_v38, 0.0  ;;  %v704_v7 = vsel %vm492_vm0, %v682_v5, 0.0  ;;  %v695_v8 = vsel %vm492_vm0, %v679_v6, 0.0  ;;  %v687_v10 = vmul.f32 %v1318_v32, %v1318_v32 }
 0x18a   : > { %v1353_v47 = vpop.f32.mrb[4].mxu0  ;;  %v1355_v48 = vpop.f32.mrb[4].mxu1  ;;  %v728_v11 = vsel %vm492_vm0, %v690_v9, 0.0  ;;  %v680_v13 = vmul.f32 %v1328_v38, %v1328_v38  ;;  %v688_v16 = vmul.f32 %v1332_v41, %v1332_v41 }
 0x18b   : > { %v1031_v51 = vpack.c.bf16 %v1353_v47, %v1353_v47  ;;  %v1360_v52 = vpop.f32.mrb[5].mxu0  ;;  %v1039_v53 = vpack.c.bf16 %v1355_v48, %v1355_v48  ;;  %v1364_v54 = vpop.f32.mrb[5].mxu1  ;;  %v719_v12 = vsel %vm492_vm0, %v687_v10, 0.0  ;;  %v632_v14 = vsel %vm492_vm0, %v1353_v47, 0.0 }
 0x18c   : > { %702 = vadd.xlane.f32.xlu1 %v701_v49  ;;  %624 = vadd.xlane.f32.xlu0 %v623_v46  ;;  %v1029_v55 = vpack.c.bf16 %v1360_v52, %v1360_v52  ;;  %v1368_v56 = vpop.f32.mrb[6].mxu0  ;;  %v1037_v57 = vpack.c.bf16 %v1364_v54, %v1364_v54  ;;  %v1372_v58 = vpop.f32.mrb[6].mxu1  ;;  %v698_v15 = vsel %vm492_vm0, %v680_v13, 0.0  ;;  %v656_v17 = vsel %vm492_vm0, %v1355_v48, 0.0 }
 0x18d   : > { %831 = vst.msk [vmem:[%s1312_s10 + $0x18] sm:$0xf] %vm824_vm9, %v1031_v51  ;;  %839 = vst.msk [vmem:[%s1312_s10 + $0x38] sm:$0xf] %vm824_vm9, %v1039_v53  ;;  %v1032_v59 = vpack.c.bf16 %v1368_v56, %v1368_v56  ;;  %v570_v60 = vpop.f32.mrb[7].mxu0  ;;  %v1040_v61 = vpack.c.bf16 %v1372_v58, %v1372_v58  ;;  %v1382_v62 = vpop.f32.mrb[7].mxu1  ;;  %v685_v23 = vmul.f32 %v1353_v47, %v1353_v47 }
 0x18e   : > { %829 = vst.msk [vmem:[%s1312_s10 + $0x10] sm:$0xf] %vm824_vm9, %v1029_v55  ;;  %v1030_v63 = vpack.c.bf16 %v570_v60, %v570_v60  ;;  %837 = vst.msk [vmem:[%s1312_s10 + $0x30] sm:$0xf] %vm824_vm9, %v1037_v57  ;;  %v1038_v0 = vpack.c.bf16 %v1382_v62, %v1382_v62  ;;  %v722_v18 = vsel %vm492_vm0, %v688_v16, 0.0  ;;  %v626_v19 = vsel %vm492_vm0, %v1360_v52, 0.0 }
 0x18f   : > { %832 = vst.msk [vmem:[%s1312_s10 + $0x1c] sm:$0xf] %vm824_vm9, %v1032_v59  ;;  %840 = vst.msk [vmem:[%s1312_s10 + $0x3c] sm:$0xf] %vm824_vm9, %v1040_v61  ;;  %v635_v20 = vsel %vm492_vm0, %v1368_v56, 0.0  ;;  %v650_v21 = vsel %vm492_vm0, %v1364_v54, 0.0  ;;  %v683_v26 = vmul.f32 %v1360_v52, %v1360_v52  ;;  %v691_v29 = vmul.f32 %v1364_v54, %v1364_v54 }
 0x190   : > { %726 = vadd.xlane.f32.xlu1 %v725_v1  ;;  %648 = vadd.xlane.f32.xlu0 %v647_v2  ;;  %830 = vst.msk [vmem:[%s1312_s10 + $0x14] sm:$0xf] %vm824_vm9, %v1030_v63  ;;  %838 = vst.msk [vmem:[%s1312_s10 + $0x34] sm:$0xf] %vm824_vm9, %v1038_v0  ;;  %v659_v22 = vsel %vm492_vm0, %v1372_v58, 0.0  ;;  %v713_v24 = vsel %vm492_vm0, %v685_v23, 0.0  ;;  %v686_v30 = vmul.f32 %v1368_v56, %v1368_v56 }
 0x191   : > { %v629_v25 = vsel %vm492_vm0, %v570_v60, 0.0  ;;  %v707_v27 = vsel %vm492_vm0, %v683_v26, 0.0  ;;  %v653_v28 = vsel %vm492_vm0, %v1382_v62, 0.0  ;;  %v684_v31 = vmul.f32 %v570_v60, %v570_v60 }
 0x192   : > { %v731_v32 = vsel %vm492_vm0, %v691_v29, 0.0  ;;  %v716_v33 = vsel %vm492_vm0, %v686_v30, 0.0  ;;  %v693_v34 = vmul.f32 %v1355_v48, %v1355_v48  ;;  %v692_v35 = vmul.f32 %v1382_v62, %v1382_v62 }
 0x193   : > { %v710_v37 = vsel %vm492_vm0, %v684_v31, 0.0  ;;  %v694_v39 = vmul.f32 %v1372_v58, %v1372_v58 }
 0x194   : > { %642 = vadd.xlane.f32.xlu0 %v641_v3  ;;  %618 = vadd.xlane.f32.xlu1 %v617_v4  ;;  %v737_v36 = vsel %vm492_vm0, %v693_v34, 0.0  ;;  %v734_v38 = vsel %vm492_vm0, %v692_v35, 0.0 }
 0x195   : > { %v740_v40 = vsel %vm492_vm0, %v694_v39, 0.0 }
 0x198   : > { %705 = vadd.xlane.f32.xlu0 %v704_v7  ;;  %696 = vadd.xlane.f32.xlu1 %v695_v8 }
 0x19c   : > { %729 = vadd.xlane.f32.xlu0 %v728_v11  ;;  %720 = vadd.xlane.f32.xlu1 %v719_v12 }
 0x1a0   : > { %699 = vadd.xlane.f32.xlu0 %v698_v15  ;;  %633 = vadd.xlane.f32.xlu1 %v632_v14 }
 0x1a4   : > { %723 = vadd.xlane.f32.xlu0 %v722_v18  ;;  %657 = vadd.xlane.f32.xlu1 %v656_v17 }
 0x1a8   : > { %627 = vadd.xlane.f32.xlu1 %v626_v19  ;;  %636 = vadd.xlane.f32.xlu0 %v635_v20 }
 0x1ac   : > { %651 = vadd.xlane.f32.xlu1 %v650_v21  ;;  %660 = vadd.xlane.f32.xlu0 %v659_v22 }
 0x1b0   : > { %714 = vadd.xlane.f32.xlu1 %v713_v24  ;;  %630 = vadd.xlane.f32.xlu0 %v629_v25 }
 0x1b4   : > { %708 = vadd.xlane.f32.xlu1 %v707_v27  ;;  %654 = vadd.xlane.f32.xlu0 %v653_v28 }
 0x1b8   : > { %732 = vadd.xlane.f32.xlu1 %v731_v32  ;;  %717 = vadd.xlane.f32.xlu0 %v716_v33 }
 0x1bc   : > { %738 = vadd.xlane.f32.xlu1 %v737_v36  ;;  %711 = vadd.xlane.f32.xlu0 %v710_v37 }
 0x1c0   : > { %735 = vadd.xlane.f32.xlu0 %v734_v38 }
 0x1c4   : > { %741 = vadd.xlane.f32.xlu0 %v740_v40 }
 0x211   : > { %v646_v41 = vpop.xlane.xlu1 %645  ;;  %v622_v42 = vpop.xlane.xlu0 %621 }
 0x212   : > { %673 = vst.msk [vmem:[%s1459_s14 + $0x50] sm:$0xff] %vm662_vm10, %v646_v41  ;;  %665 = vst.msk [vmem:[%s1459_s14 + $0x10] sm:$0xff] %vm662_vm10, %v622_v42 }
 0x215   : > { %v640_v43 = vpop.xlane.xlu1 %639  ;;  %v616_v44 = vpop.xlane.xlu0 %615 }
 0x216   : > { %671 = vst.msk [vmem:[%s1459_s14 + $0x40] sm:$0xff] %vm662_vm10, %v640_v43  ;;  %663 = vst.msk [vmem:[%s1459_s14] sm:$0xff] %vm662_vm10, %v616_v44 }
 0x219   : > { %v703_v45 = vpop.xlane.xlu1 %702  ;;  %v625_v46 = vpop.xlane.xlu0 %624 }
 0x21a   : > { %746 = vst.msk [vmem:[%s1459_s14 + $0x10] sm:$0xff] %vm743_vm11, %v703_v45 }
 0x21b   : > { %666 = vst.msk [vmem:[%s1459_s14 + $0x18] sm:$0xff] %vm662_vm10, %v625_v46 }
 0x21d   : > { %v727_v47 = vpop.xlane.xlu1 %726  ;;  %v649_v48 = vpop.xlane.xlu0 %648 }
 0x21e   : > { %754 = vst.msk [vmem:[%s1459_s14 + $0x50] sm:$0xff] %vm743_vm11, %v727_v47 }
 0x21f   : > { %674 = vst.msk [vmem:[%s1459_s14 + $0x58] sm:$0xff] %vm662_vm10, %v649_v48 }
 0x221   : > { %v643_v49 = vpop.xlane.xlu0 %642  ;;  %v619_v50 = vpop.xlane.xlu1 %618 }
 0x222   : > { %672 = vst.msk [vmem:[%s1459_s14 + $0x48] sm:$0xff] %vm662_vm10, %v643_v49  ;;  %664 = vst.msk [vmem:[%s1459_s14 + $0x8] sm:$0xff] %vm662_vm10, %v619_v50 }
 0x225   : > { %v706_v51 = vpop.xlane.xlu0 %705  ;;  %v697_v52 = vpop.xlane.xlu1 %696 }
 0x226   : > { %747 = vst.msk [vmem:[%s1459_s14 + $0x18] sm:$0xff] %vm743_vm11, %v706_v51  ;;  %744 = vst.msk [vmem:[%s1459_s14] sm:$0xff] %vm743_vm11, %v697_v52 }
 0x229   : > { %v730_v53 = vpop.xlane.xlu0 %729  ;;  %v721_v54 = vpop.xlane.xlu1 %720 }
 0x22a   : > { %755 = vst.msk [vmem:[%s1459_s14 + $0x58] sm:$0xff] %vm743_vm11, %v730_v53  ;;  %752 = vst.msk [vmem:[%s1459_s14 + $0x40] sm:$0xff] %vm743_vm11, %v721_v54 }
 0x22d   : > { %v700_v55 = vpop.xlane.xlu0 %699  ;;  %v634_v56 = vpop.xlane.xlu1 %633 }
 0x22e   : > { %745 = vst.msk [vmem:[%s1459_s14 + $0x8] sm:$0xff] %vm743_vm11, %v700_v55 }
 0x22f   : > { %669 = vst.msk [vmem:[%s1459_s14 + $0x30] sm:$0xff] %vm662_vm10, %v634_v56 }
 0x231   : > { %v724_v57 = vpop.xlane.xlu0 %723  ;;  %v658_v58 = vpop.xlane.xlu1 %657 }
 0x232   : > { %753 = vst.msk [vmem:[%s1459_s14 + $0x48] sm:$0xff] %vm743_vm11, %v724_v57 }
 0x233   : > { %677 = vst.msk [vmem:[%s1459_s14 + $0x70] sm:$0xff] %vm662_vm10, %v658_v58 }
 0x235   : > { %v628_v59 = vpop.xlane.xlu1 %627  ;;  %v637_v60 = vpop.xlane.xlu0 %636 }
 0x236   : > { %667 = vst.msk [vmem:[%s1459_s14 + $0x20] sm:$0xff] %vm662_vm10, %v628_v59  ;;  %670 = vst.msk [vmem:[%s1459_s14 + $0x38] sm:$0xff] %vm662_vm10, %v637_v60 }
 0x239   : > { %v652_v61 = vpop.xlane.xlu1 %651  ;;  %v661_v62 = vpop.xlane.xlu0 %660 }
 0x23a   : > { %675 = vst.msk [vmem:[%s1459_s14 + $0x60] sm:$0xff] %vm662_vm10, %v652_v61  ;;  %678 = vst.msk [vmem:[%s1459_s14 + $0x78] sm:$0xff] %vm662_vm10, %v661_v62 }
 0x23d   : > { %v715_v63 = vpop.xlane.xlu1 %714  ;;  %v631_v0 = vpop.xlane.xlu0 %630 }
 0x23e   : > { %750 = vst.msk [vmem:[%s1459_s14 + $0x30] sm:$0xff] %vm743_vm11, %v715_v63 }
 0x23f   : > { %668 = vst.msk [vmem:[%s1459_s14 + $0x28] sm:$0xff] %vm662_vm10, %v631_v0 }
 0x241   : > { %v709_v1 = vpop.xlane.xlu1 %708  ;;  %v655_v2 = vpop.xlane.xlu0 %654 }
 0x242   : > { %748 = vst.msk [vmem:[%s1459_s14 + $0x20] sm:$0xff] %vm743_vm11, %v709_v1 }
 0x243   : > { %676 = vst.msk [vmem:[%s1459_s14 + $0x68] sm:$0xff] %vm662_vm10, %v655_v2 }
 0x245   : > { %v733_v3 = vpop.xlane.xlu1 %732  ;;  %v718_v4 = vpop.xlane.xlu0 %717 }
 0x246   : > { %756 = vst.msk [vmem:[%s1459_s14 + $0x60] sm:$0xff] %vm743_vm11, %v733_v3  ;;  %751 = vst.msk [vmem:[%s1459_s14 + $0x38] sm:$0xff] %vm743_vm11, %v718_v4 }
 0x249   : > { %v739_v5 = vpop.xlane.xlu1 %738  ;;  %v712_v6 = vpop.xlane.xlu0 %711 }
 0x24a   : > { %758 = vst.msk [vmem:[%s1459_s14 + $0x70] sm:$0xff] %vm743_vm11, %v739_v5  ;;  %749 = vst.msk [vmem:[%s1459_s14 + $0x28] sm:$0xff] %vm743_vm11, %v712_v6 }
 0x24d   : > { %v736_v7 = vpop.xlane.xlu0 %735 }
 0x24e   : > { %757 = vst.msk [vmem:[%s1459_s14 + $0x68] sm:$0xff] %vm743_vm11, %v736_v7 }
 0x251   : > { %v742_v8 = vpop.xlane.xlu0 %741 }
 0x252   : > { %759 = vst.msk [vmem:[%s1459_s14 + $0x78] sm:$0xff] %vm743_vm11, %v742_v8 }
 0x253 PF: > { %s16_s20 = sadd.s32 1, %s1161_s20   ;;  %s1540_s18 = smov %s1157_s19 }
 0x254   : > { %p13_p5 = scmp.ge.s32.totalorder %s16_s20, 4   ;;  %s1541_s19 = smov %s1543_s21 }
 0x256   :  { %15 = sbr.rel (!%p13_p5) target bundleno = 2 (0x2), region = 78 }

// kernel: pointnet_forward.7
= control target key start
LH: loop header
LB: loop body
LE: loop exit
PB: predicated region body
PF: predicated region fallthrough
CT: control target
= control target key end

     0   :  { %s730_s12 = smov 0   ;;  %s732_s13 = smov 0   ;;  %s935_s0 = inlined_call_operand.vmem [shape: bf16[2,128,64], index: 0, kind: input, shape index: {}]   ;;  %s936_s1 = inlined_call_operand.vmem [shape: f32[128,1], index: 1, kind: input, shape index: {}]   ;;  %s937_s2 = inlined_call_operand.vmem [shape: f32[128,1], index: 2, kind: input, shape index: {}]   ;;  %s938_s3 = inlined_call_operand.vmem [shape: f32[2,128,64], index: 3, kind: output, shape index: {}]  }
   0x1   :  { %s734_s14 = smov 0  }
   0x2 LB: > { %s25_s15 = sadd.s32 1, %s703_s13  ;;  %p610_p0 = scmp.ge.s32.totalorder %s707_s14, 1  ;;  %s707_s14 = sphi %s734_s14, %s13_s14   ;;  %s703_s13 = sphi %s732_s13, %s940_s13   ;;  %s699_s12 = sphi %s730_s12, %s939_s12  }
   0x3   : > { %p27_p1 = scmp.ge.s32.totalorder %s25_s15, 2  ;;  %p156_p2 = scmp.lt.s32.totalorder %s707_s14, 3 }
   0x5   : > { %s942_s15 = smov (%p27_p1, %s25_s15), 0  ;;  %p157_p3 = pnand %p610_p0, %p156_p2 }
   0x6   : > { %v236_v0 = vld [vmem:[%s936_s1 + $0x10] sm:$0xff] (!%p157_p3)  ;;  %v234_v1 = vld [vmem:[%s936_s1] sm:$0xff] (!%p157_p3)  ;;  %v709_v2 = vmov (!%p157_p3), 0   ;;  %v237_v3 = vld [vmem:[%s936_s1 + $0x18] sm:$0xff] (!%p157_p3)  ;;  %p186_p4 = scmp.lt.s32.totalorder (!%p157_p3), %s699_s12, 1  ;;  %vm506_vm0 = vcmask (!%p157_p3), 523264  }
   0x7   : > { %160 = sbr.rel (%p157_p3) target bundleno = 202 (0xca), region = 32  ;;  %684 = vset.pattern.permute.xlu1 (!%p157_p3), %v709_v2  ;;  %683 = vset.pattern.permute.xlu0 (!%p157_p3), %v709_v2  ;;  %v235_v4 = vld [vmem:[%s936_s1 + $0x8] sm:$0xff] (!%p157_p3)  ;;  %v238_v6 = vld [vmem:[%s936_s1 + $0x20] sm:$0xff] (!%p157_p3)  ;;  %v241_v7 = vld [vmem:[%s936_s1 + $0x38] sm:$0xff] (!%p157_p3) }
   0x8   : > { %262 = vperm.xlu1 (!%p157_p3), %684, %v236_v0   ;;  %252 = vperm.xlu0 (!%p157_p3), %683, %v234_v1   ;;  %v239_v5 = vld [vmem:[%s936_s1 + $0x28] sm:$0xff] (!%p157_p3)  ;;  %v240_v8 = vld [vmem:[%s936_s1 + $0x30] sm:$0xff] (!%p157_p3)  ;;  %v242_v10 = vld [vmem:[%s936_s1 + $0x40] sm:$0xff] (!%p157_p3) }
   0x9   : > { %v243_v9 = vld [vmem:[%s936_s1 + $0x48] sm:$0xff] (!%p157_p3)  ;;  %v245_v11 = vld [vmem:[%s936_s1 + $0x58] sm:$0xff] (!%p157_p3)  ;;  %v244_v12 = vld [vmem:[%s936_s1 + $0x50] sm:$0xff] (!%p157_p3) }
   0xa   : > { %v247_v13 = vld [vmem:[%s936_s1 + $0x68] sm:$0xff] (!%p157_p3)  ;;  %v246_v14 = vld [vmem:[%s936_s1 + $0x60] sm:$0xff] (!%p157_p3)  ;;  %v249_v15 = vld [vmem:[%s936_s1 + $0x78] sm:$0xff] (!%p157_p3) }
   0xb   : > { %v248_v16 = vld [vmem:[%s936_s1 + $0x70] sm:$0xff] (!%p157_p3)  ;;  %v347_v17 = vld [vmem:[%s937_s2 + $0x8] sm:$0xff] (!%p157_p3)  ;;  %v346_v18 = vld [vmem:[%s937_s2] sm:$0xff] (!%p157_p3) }
   0xc   : > { %267 = vperm.xlu1 (!%p157_p3), %684, %v237_v3   ;;  %257 = vperm.xlu0 (!%p157_p3), %683, %v235_v4   ;;  %v349_v19 = vld [vmem:[%s937_s2 + $0x18] sm:$0xff] (!%p157_p3)  ;;  %v348_v20 = vld [vmem:[%s937_s2 + $0x10] sm:$0xff] (!%p157_p3)  ;;  %v351_v21 = vld [vmem:[%s937_s2 + $0x28] sm:$0xff] (!%p157_p3) }
   0xd   : > { %v350_v22 = vld [vmem:[%s937_s2 + $0x20] sm:$0xff] (!%p157_p3)  ;;  %v353_v23 = vld [vmem:[%s937_s2 + $0x38] sm:$0xff] (!%p157_p3)  ;;  %v352_v24 = vld [vmem:[%s937_s2 + $0x30] sm:$0xff] (!%p157_p3) }
   0xe   : > { %v355_v25 = vld [vmem:[%s937_s2 + $0x48] sm:$0xff]  ;;  %v354_v26 = vld [vmem:[%s937_s2 + $0x40] sm:$0xff]  ;;  %v357_v27 = vld [vmem:[%s937_s2 + $0x58] sm:$0xff]  ;;  %s944_s12 = smov (!%p186_p4, %s699_s12), 1 }
   0xf   : > { %v356_v28 = vld [vmem:[%s937_s2 + $0x50] sm:$0xff]  ;;  %v359_v29 = vld [vmem:[%s937_s2 + $0x68] sm:$0xff]  ;;  %v358_v30 = vld [vmem:[%s937_s2 + $0x60] sm:$0xff]  ;;  %s617_s7 = sshll.u32 %s944_s12, 6  ;;  %s618_s11 = sshll.u32 %s944_s12, 7 }
  0x10   : > { %277 = vperm.xlu1 %684, %v239_v5   ;;  %272 = vperm.xlu0 %683, %v238_v6   ;;  %v361_v31 = vld [vmem:[%s937_s2 + $0x78] sm:$0xff]  ;;  %v360_v32 = vld [vmem:[%s937_s2 + $0x70] sm:$0xff]  ;;  %s862_s10 = scalar_lea.vmem %s935_s0, %s617_s7  ;;  %s880_s18 = scalar_lea.vmem %s938_s3, %s618_s11 }
  0x11   : > { %v620_v45 = vld [vmem:[%s862_s10] sm:$0xff]   ;;  %v651_v48 = vld [vmem:[%s862_s10 + $0x8] sm:$0xff]   ;;  %v652_v55 = vld [vmem:[%s862_s10 + $0x10] sm:$0xff]  }
  0x12   : > { %v621_v49 = vunpack.c.l.bf16 %v620_v45  ;;  %v622_v50 = vunpack.c.h.bf16 %v620_v45  ;;  %v625_v53 = vunpack.c.l.bf16 %v651_v48  ;;  %v626_v54 = vunpack.c.h.bf16 %v651_v48  ;;  %v653_v2 = vld [vmem:[%s862_s10 + $0x18] sm:$0xff]   ;;  %v656_v45 = vld [vmem:[%s862_s10 + $0x30] sm:$0xff]  }
  0x13   : > { %v630_v60 = vunpack.c.h.bf16 %v652_v55  ;;  %v629_v1 = vunpack.c.l.bf16 %v652_v55 }
  0x14   : > { %287 = vperm.xlu1 %684, %v241_v7   ;;  %282 = vperm.xlu0 %683, %v240_v8  }
  0x18   : > { %297 = vperm.xlu1 %684, %v243_v9   ;;  %292 = vperm.xlu0 %683, %v242_v10  }
  0x1c   : > { %307 = vperm.xlu1 %684, %v245_v11   ;;  %302 = vperm.xlu0 %683, %v244_v12  }
  0x20   : > { %317 = vperm.xlu1 %684, %v247_v13   ;;  %312 = vperm.xlu0 %683, %v246_v14   ;;  %v634_v13 = vunpack.c.h.bf16 %v653_v2  ;;  %v633_v14 = vunpack.c.l.bf16 %v653_v2 }
  0x24   : > { %327 = vperm.xlu1 %684, %v249_v15   ;;  %322 = vperm.xlu0 %683, %v248_v16   ;;  %v654_v15 = vld [vmem:[%s862_s10 + $0x20] sm:$0xff]  }
  0x28   : > { %369 = vperm.xlu1 %684, %v347_v17   ;;  %364 = vperm.xlu0 %683, %v346_v18  }
  0x2c   : > { %379 = vperm.xlu1 %684, %v349_v19   ;;  %374 = vperm.xlu0 %683, %v348_v20  }
  0x30   : > { %389 = vperm.xlu1 %684, %v351_v21   ;;  %384 = vperm.xlu0 %683, %v350_v22  }
  0x34   : > { %399 = vperm.xlu1 %684, %v353_v23   ;;  %394 = vperm.xlu0 %683, %v352_v24  }
  0x38   : > { %409 = vperm.xlu1 %684, %v355_v25   ;;  %404 = vperm.xlu0 %683, %v354_v26   ;;  %v638_v26 = vunpack.c.h.bf16 %v654_v15 }
  0x3c   : > { %419 = vperm.xlu1 %684, %v357_v27   ;;  %414 = vperm.xlu0 %683, %v356_v28   ;;  %v637_v27 = vunpack.c.l.bf16 %v654_v15  ;;  %v655_v28 = vld [vmem:[%s862_s10 + $0x28] sm:$0xff]  }
  0x40   : > { %429 = vperm.xlu1 %684, %v359_v29   ;;  %424 = vperm.xlu0 %683, %v358_v30  }
  0x44   : > { %439 = vperm.xlu1 %684, %v361_v31   ;;  %434 = vperm.xlu0 %683, %v360_v32  }
  0x87   : > { %v263_v33 = vpop.permute.xlu1 %262  ;;  %v253_v34 = vpop.permute.xlu0 %252 }
  0x88   : > { %v330_v56 = vmul.f32 %v621_v49, %v253_v34  ;;  %v332_v63 = vmul.f32 %v625_v53, %v263_v33 }
  0x8b   : > { %v268_v35 = vpop.permute.xlu1 %267  ;;  %v258_v36 = vpop.permute.xlu0 %257 }
  0x8c   : > { %v331_v57 = vmul.f32 %v622_v50, %v258_v36  ;;  %v333_v0 = vmul.f32 %v626_v54, %v268_v35 }
  0x8f   : > { %v278_v37 = vpop.permute.xlu1 %277  ;;  %v273_v38 = vpop.permute.xlu0 %272 }
  0x90   : > { %v335_v11 = vmul.f32 %v630_v60, %v278_v37  ;;  %v334_v12 = vmul.f32 %v629_v1, %v273_v38  ;;  %v657_v60 = vld [vmem:[%s862_s10 + $0x38] sm:$0xff]  }
  0x93   : > { %v288_v39 = vpop.permute.xlu1 %287  ;;  %v283_v40 = vpop.permute.xlu0 %282 }
  0x94   : > { %v337_v24 = vmul.f32 %v634_v13, %v288_v39  ;;  %v336_v25 = vmul.f32 %v633_v14, %v283_v40  ;;  %v642_v39 = vunpack.c.h.bf16 %v655_v28  ;;  %v641_v40 = vunpack.c.l.bf16 %v655_v28 }
  0x97   : > { %v850_v41 = vpop.permute.xlu1 %297  ;;  %v852_v42 = vpop.permute.xlu0 %292 }
  0x98   : > { %v339_v37 = vmul.f32 %v638_v26, %v850_v41  ;;  %v338_v38 = vmul.f32 %v637_v27, %v852_v42 }
  0x9b   : > { %v855_v43 = vpop.permute.xlu1 %307  ;;  %v857_v44 = vpop.permute.xlu0 %302 }
  0x9f   : > { %v865_v46 = vpop.permute.xlu1 %317  ;;  %v867_v47 = vpop.permute.xlu0 %312 }
  0xa3   : > { %v870_v51 = vpop.permute.xlu1 %327  ;;  %v872_v52 = vpop.permute.xlu0 %322 }
  0xa7   : > { %v370_v58 = vpop.permute.xlu1 %369  ;;  %v365_v59 = vpop.permute.xlu0 %364 }
  0xa8   : > { %v443_v61 = vadd.f32 %v370_v58, %v331_v57  ;;  %v442_v62 = vadd.f32 %v365_v59, %v330_v56  ;;  %v341_v56 = vmul.f32 %v642_v39, %v855_v43  ;;  %v340_v57 = vmul.f32 %v641_v40, %v857_v44 }
  0xa9   : > { %v646_v58 = vunpack.c.h.bf16 %v656_v45  ;;  %v645_v59 = vunpack.c.l.bf16 %v656_v45 }
  0xaa   : > { %vm459_vm1 = vcmp.gt.f32.partialorder %v443_v61, 0.0  ;;  %v475_v3 = vmul.f32 0.2, %v443_v61  ;;  %vm458_vm2 = vcmp.gt.f32.partialorder %v442_v62, 0.0  ;;  %v474_v4 = vmul.f32 0.2, %v442_v62 }
  0xab   : > { %v380_v5 = vpop.permute.xlu1 %379  ;;  %v375_v6 = vpop.permute.xlu0 %374  ;;  %v343_v44 = vmul.f32 %v646_v58, %v865_v46 }
  0xac   : > { %v491_v7 = vsel %vm459_vm1, %v443_v61, %v475_v3  ;;  %v490_v8 = vsel %vm458_vm2, %v442_v62, %v474_v4  ;;  %v445_v9 = vadd.f32 %v380_v5, %v333_v0  ;;  %v444_v10 = vadd.f32 %v375_v6, %v332_v63 }
  0xad   : > { %508 = vst.msk [vmem:[%s880_s18 + $0x8] sm:$0xff] %vm506_vm0, %v491_v7  ;;  %507 = vst.msk [vmem:[%s880_s18] sm:$0xff] %vm506_vm0, %v490_v8  ;;  %v342_v4 = vmul.f32 %v645_v59, %v867_v47  ;;  %v650_v5 = vunpack.c.h.bf16 %v657_v60  ;;  %v649_v6 = vunpack.c.l.bf16 %v657_v60 }
  0xae   : > { %vm461_vm3 = vcmp.gt.f32.partialorder %v445_v9, 0.0  ;;  %v477_v16 = vmul.f32 0.2, %v445_v9  ;;  %vm460_vm4 = vcmp.gt.f32.partialorder %v444_v10, 0.0  ;;  %v476_v17 = vmul.f32 0.2, %v444_v10 }
  0xaf   : > { %v390_v18 = vpop.permute.xlu1 %389  ;;  %v385_v19 = vpop.permute.xlu0 %384  ;;  %v345_v47 = vmul.f32 %v650_v5, %v870_v51  ;;  %v344_v14 = vmul.f32 %v649_v6, %v872_v52 }
  0xb0   : > { %v493_v20 = vsel %vm461_vm3, %v445_v9, %v477_v16  ;;  %v492_v21 = vsel %vm460_vm4, %v444_v10, %v476_v17  ;;  %v447_v22 = vadd.f32 %v390_v18, %v335_v11  ;;  %v446_v23 = vadd.f32 %v385_v19, %v334_v12 }
  0xb1   : > { %510 = vst.msk [vmem:[%s880_s18 + $0x18] sm:$0xff] %vm506_vm0, %v493_v20  ;;  %509 = vst.msk [vmem:[%s880_s18 + $0x10] sm:$0xff] %vm506_vm0, %v492_v21 }
  0xb2   : > { %vm463_vm5 = vcmp.gt.f32.partialorder %v447_v22, 0.0  ;;  %v479_v29 = vmul.f32 0.2, %v447_v22  ;;  %vm462_vm6 = vcmp.gt.f32.partialorder %v446_v23, 0.0  ;;  %v478_v30 = vmul.f32 0.2, %v446_v23 }
  0xb3   : > { %v400_v31 = vpop.permute.xlu1 %399  ;;  %v395_v32 = vpop.permute.xlu0 %394 }
  0xb4   : > { %v495_v33 = vsel %vm463_vm5, %v447_v22, %v479_v29  ;;  %v494_v34 = vsel %vm462_vm6, %v446_v23, %v478_v30  ;;  %v449_v35 = vadd.f32 %v400_v31, %v337_v24  ;;  %v448_v36 = vadd.f32 %v395_v32, %v336_v25 }
  0xb5   : > { %512 = vst.msk [vmem:[%s880_s18 + $0x28] sm:$0xff] %vm506_vm0, %v495_v33  ;;  %511 = vst.msk [vmem:[%s880_s18 + $0x20] sm:$0xff] %vm506_vm0, %v494_v34 }
  0xb6   : > { %vm465_vm7 = vcmp.gt.f32.partialorder %v449_v35, 0.0  ;;  %v481_v48 = vmul.f32 0.2, %v449_v35  ;;  %vm464_vm8 = vcmp.gt.f32.partialorder %v448_v36, 0.0  ;;  %v480_v49 = vmul.f32 0.2, %v448_v36 }
  0xb7   : > { %v410_v50 = vpop.permute.xlu1 %409  ;;  %v405_v53 = vpop.permute.xlu0 %404 }
  0xb8   : > { %v497_v54 = vsel %vm465_vm7, %v449_v35, %v481_v48  ;;  %v496_v41 = vsel %vm464_vm8, %v448_v36, %v480_v49  ;;  %v451_v55 = vadd.f32 %v410_v50, %v339_v37  ;;  %v450_v42 = vadd.f32 %v405_v53, %v338_v38 }
  0xb9   : > { %514 = vst.msk [vmem:[%s880_s18 + $0x38] sm:$0xff] %vm506_vm0, %v497_v54  ;;  %513 = vst.msk [vmem:[%s880_s18 + $0x30] sm:$0xff] %vm506_vm0, %v496_v41 }
  0xba   : > { %vm467_vm9 = vcmp.gt.f32.partialorder %v451_v55, 0.0  ;;  %v483_v61 = vmul.f32 0.2, %v451_v55  ;;  %vm466_vm10 = vcmp.gt.f32.partialorder %v450_v42, 0.0  ;;  %v482_v62 = vmul.f32 0.2, %v450_v42 }
  0xbb   : > { %v420_v63 = vpop.permute.xlu1 %419  ;;  %v415_v0 = vpop.permute.xlu0 %414 }
  0xbc   : > { %v499_v1 = vsel %vm467_vm9, %v451_v55, %v483_v61  ;;  %v498_v2 = vsel %vm466_vm10, %v450_v42, %v482_v62  ;;  %v453_v43 = vadd.f32 %v420_v63, %v341_v56  ;;  %v452_v3 = vadd.f32 %v415_v0, %v340_v57 }
  0xbd   : > { %516 = vst.msk [vmem:[%s880_s18 + $0x48] sm:$0xff] %vm506_vm0, %v499_v1  ;;  %515 = vst.msk [vmem:[%s880_s18 + $0x40] sm:$0xff] %vm506_vm0, %v498_v2 }
  0xbe   : > { %vm469_vm11 = vcmp.gt.f32.partialorder %v453_v43, 0.0  ;;  %v485_v7 = vmul.f32 0.2, %v453_v43  ;;  %vm468_vm12 = vcmp.gt.f32.partialorder %v452_v3, 0.0  ;;  %v484_v8 = vmul.f32 0.2, %v452_v3 }
  0xbf   : > { %v430_v9 = vpop.permute.xlu1 %429  ;;  %v425_v10 = vpop.permute.xlu0 %424 }
  0xc0   : > { %v501_v11 = vsel %vm469_vm11, %v453_v43, %v485_v7  ;;  %v500_v12 = vsel %vm468_vm12, %v452_v3, %v484_v8  ;;  %v455_v13 = vadd.f32 %v430_v9, %v343_v44  ;;  %v454_v46 = vadd.f32 %v425_v10, %v342_v4 }
  0xc1   : > { %518 = vst.msk [vmem:[%s880_s18 + $0x58] sm:$0xff] %vm506_vm0, %v501_v11  ;;  %517 = vst.msk [vmem:[%s880_s18 + $0x50] sm:$0xff] %vm506_vm0, %v500_v12 }
  0xc2   : > { %vm471_vm13 = vcmp.gt.f32.partialorder %v455_v13, 0.0  ;;  %v487_v15 = vmul.f32 0.2, %v455_v13  ;;  %vm470_vm14 = vcmp.gt.f32.partialorder %v454_v46, 0.0  ;;  %v486_v16 = vmul.f32 0.2, %v454_v46 }
  0xc3   : > { %v440_v17 = vpop.permute.xlu1 %439  ;;  %v435_v18 = vpop.permute.xlu0 %434 }
  0xc4   : > { %v503_v19 = vsel %vm471_vm13, %v455_v13, %v487_v15  ;;  %v502_v20 = vsel %vm470_vm14, %v454_v46, %v486_v16  ;;  %v457_v21 = vadd.f32 %v440_v17, %v345_v47  ;;  %v456_v22 = vadd.f32 %v435_v18, %v344_v14 }
  0xc5   : > { %520 = vst.msk [vmem:[%s880_s18 + $0x68] sm:$0xff] %vm506_vm0, %v503_v19  ;;  %519 = vst.msk [vmem:[%s880_s18 + $0x60] sm:$0xff] %vm506_vm0, %v502_v20 }
  0xc6   : > { %vm473_vm15 = vcmp.gt.f32.partialorder %v457_v21, 0.0  ;;  %v489_v51 = vmul.f32 0.2, %v457_v21  ;;  %vm472_vm1 = vcmp.gt.f32.partialorder %v456_v22, 0.0  ;;  %v488_v52 = vmul.f32 0.2, %v456_v22 }
  0xc8   : > { %v505_v23 = vsel %vm473_vm15, %v457_v21, %v489_v51  ;;  %v504_v24 = vsel %vm472_vm1, %v456_v22, %v488_v52 }
  0xc9   : > { %522 = vst.msk [vmem:[%s880_s18 + $0x78] sm:$0xff] %vm506_vm0, %v505_v23  ;;  %521 = vst.msk [vmem:[%s880_s18 + $0x70] sm:$0xff] %vm506_vm0, %v504_v24 }
  0xca PF: > { %s13_s14 = sadd.s32 1, %s707_s14   ;;  %s939_s12 = smov %s703_s13 }
  0xcb   : > { %p10_p5 = scmp.ge.s32.totalorder %s13_s14, 4   ;;  %s940_s13 = smov %s942_s15 }
  0xcd   :  { %12 = sbr.rel (!%p10_p5) target bundleno = 2 (0x2), region = 62 }

</bundles_post_ra>
